<compile_context>
chip_gen: v6e
topology: v6e:2x2x1
jax: 0.10.0
libtpu: 0.0.40
codegen_flags: <defaults>
</compile_context>

<pallas_src>
import functools

import jax
import jax.numpy as jnp
from jax import lax
from jax.experimental import pallas as pl
from jax.experimental.pallas import tpu as pltpu


def ranknet_kernel(x_ref, w1_ref, b1_ref, w2_ref, b2_ref, o_ref):
    # Per-tile shapes:
    #   x: (TB, F), W1: (F, H), b1: (1, H), W2: (1, H) [PyTorch layout],
    #   b2: (1, 1), o: (1, TB)  -- batch on lanes (lane-dense store).
    x = x_ref[...]
    # Layer 1 on the MXU, full f32 accuracy (HIGHEST); cost hidden under DMA.
    h = jnp.dot(x, w1_ref[...],
                preferred_element_type=jnp.float32,
                precision=lax.Precision.HIGHEST) + b1_ref[...]
    h = jnp.maximum(h, 0.0)                                    # ReLU (VPU)
    # Layer 2 computed transposed: contract H of W2 (1,H) with H of h (TB,H)
    # -> (1, TB).  Standard A @ B^T form; no XLU transpose of the h tile.
    s = lax.dot_general(
        w2_ref[...], h,
        dimension_numbers=(((1,), (1,)), ((), ())),
        preferred_element_type=jnp.float32,
        precision=lax.Precision.HIGHEST) + b2_ref[...]         # (1, TB)
    # Exact sigmoid via a single EUP tanh: sigmoid(s) = 0.5*(tanh(s/2)+1).
    o_ref[...] = (0.5 * (jnp.tanh(0.5 * s) + 1.0)).astype(o_ref.dtype)


@functools.partial(jax.jit, static_argnames=("block_b",))
def _ranknet_forward_impl(x, w1, b1, w2, b2, block_b):
    B, F = x.shape
    H = w1.shape[1]
    grid = (pl.cdiv(B, block_b),)

    # VMEM budget with lane padding: a (TB, F) f32 tile is padded F -> 128
    # lanes, so each x buffer costs TB * 128 * 4 B (x2 double-buffered), plus
    # one h tile and small residents/slack.  Cap well under v7x's 64 MiB.
    lane_pad = 128 * max(1, (max(F, H) + 127) // 128)
    vmem_bytes = 3 * block_b * lane_pad * 4 + 4 * 1024 * 1024
    vmem_bytes = int(min(max(vmem_bytes, 16 * 1024 * 1024), 56 * 1024 * 1024))

    out = pl.pallas_call(
        ranknet_kernel,
        out_shape=jax.ShapeDtypeStruct((1, B), jnp.float32),
        grid_spec=pltpu.PrefetchScalarGridSpec(
            num_scalar_prefetch=0,
            grid=grid,
            in_specs=[
                pl.BlockSpec((block_b, F), lambda i: (i, 0)),  # x tile (streamed)
                pl.BlockSpec((F, H), lambda i: (0, 0)),        # W1 (resident)
                pl.BlockSpec((1, H), lambda i: (0, 0)),        # b1 (resident)
                pl.BlockSpec((1, H), lambda i: (0, 0)),        # W2 (resident)
                pl.BlockSpec((1, 1), lambda i: (0, 0)),        # b2 (resident)
            ],
            # Lane-dense output: batch on lanes, one row.
            out_specs=pl.BlockSpec((1, block_b), lambda i: (0, i)),
        ),
        compiler_params=pltpu.CompilerParams(
            dimension_semantics=("parallel",),
            vmem_limit_bytes=vmem_bytes,
        ),
    )(x, w1, b1, w2, b2)
    return out.reshape(B, 1)


def ranknet_forward(x, w1, b1, w2, b2, block_b=4096):
    """RankNet forward: sigmoid(relu(x @ W1 + b1) @ W2^T + b2) -> (B, 1).

    block_b should be a multiple of 128.  If the whole batch fits in one tile
    the wrapper re-splits it into two even 128-aligned tiles so the grid has
    two steps (both TensorCores on v7x under dimension_semantics="parallel").
    """
    B = x.shape[0]
    if B <= block_b:
        if B >= 256:
            block_b = ((pl.cdiv(B, 2) + 127) // 128) * 128  # grid = (2,)
        else:
            block_b = B  # single tile equal to the full array dims (legal)
    return _ranknet_forward_impl(x, w1, b1, w2, b2, block_b)


def init_params(key, feat_size, linear_dim):
    """Deterministic init mimicking nn.Linear.

    W1 is stored as [in, out] (transposed vs PyTorch) so layer 1 is x @ W1.
    W2 is stored as [out=1, in] (native PyTorch layout) for the transposed
    second projection inside the kernel.
    """
    k1, k2, k3, k4 = jax.random.split(key, 4)
    bound1 = 1.0 / jnp.sqrt(feat_size)
    bound2 = 1.0 / jnp.sqrt(linear_dim)
    w1 = jax.random.uniform(k1, (feat_size, linear_dim), jnp.float32,
                            -bound1, bound1)
    b1 = jax.random.uniform(k2, (1, linear_dim), jnp.float32, -bound1, bound1)
    w2 = jax.random.uniform(k3, (1, linear_dim), jnp.float32, -bound2, bound2)
    b2 = jax.random.uniform(k4, (1, 1), jnp.float32, -bound2, bound2)
    return w1, b1, w2, b2


# TODO(synk): forward_pairwise / predict are trivial reuses of the same kernel
# (two forward passes + sigmoid of the score difference); not ported here.


if __name__ == "__main__":
    # Small demo shapes: RankNet-style feature ranker.  batch=512 is split by
    # the wrapper into two 256-row tiles -> grid=(2,), exercising both TCs.
    batch, feat_size, linear_dim = 512, 32, 32

    key = jax.random.PRNGKey(0)
    kx, kp = jax.random.split(key)
    x = jax.random.normal(kx, (batch, feat_size), jnp.float32)
    w1, b1, w2, b2 = init_params(kp, feat_size, linear_dim)

    out = ranknet_forward(x, w1, b1, w2, b2)
    out = jax.block_until_ready(out)

    # Pure-JAX reference: sigmoid(relu(x @ W1 + b1) @ W2^T + b2), with matmul
    # precision matched to the kernel (HIGHEST) so the check is tight.
    h_ref = jnp.maximum(
        jnp.dot(x, w1, precision=lax.Precision.HIGHEST) + b1, 0.0)
    ref = jax.nn.sigmoid(
        jnp.dot(h_ref, w2.T, precision=lax.Precision.HIGHEST) + b2)

    assert out.shape == (batch, 1)
    assert jnp.allclose(out, ref, atol=1e-4, rtol=1e-4), (
        "max abs err = %g" % float(jnp.max(jnp.abs(out - ref))))

    print("KERNEL_OK")
</pallas_src>

<mosaic_0001>
module attributes {stable_mosaic.version = 11 : i64} {
  func.func @ranknet_kernel(%arg0: i32, %arg1: memref<256x32xf32, #tpu.memory_space<vmem>>, %arg2: memref<32x32xf32, #tpu.memory_space<vmem>>, %arg3: memref<1x32xf32, #tpu.memory_space<vmem>>, %arg4: memref<1x32xf32, #tpu.memory_space<vmem>>, %arg5: memref<1x1xf32, #tpu.memory_space<vmem>>, %arg6: memref<1x256xf32, #tpu.memory_space<vmem>>) attributes {dimension_semantics = [#tpu.dimension_semantics<parallel>], iteration_bounds = array<i64: 2>, scalar_prefetch = 0 : i64, scratch_operands = 0 : i64, tpu.core_type = #tpu.core_type<tc>, window_params = [{transform_indices = @transform_0, window_bounds = array<i64: 256, 32>}, {pipeline_mode = #tpu.pipeline_mode<synchronous>, transform_indices = @transform_1, window_bounds = array<i64: 32, 32>}, {pipeline_mode = #tpu.pipeline_mode<synchronous>, transform_indices = @transform_2, window_bounds = array<i64: 1, 32>}, {pipeline_mode = #tpu.pipeline_mode<synchronous>, transform_indices = @transform_3, window_bounds = array<i64: 1, 32>}, {pipeline_mode = #tpu.pipeline_mode<synchronous>, transform_indices = @transform_4, window_bounds = array<i64: 1, 1>}, {transform_indices = @transform_5, window_bounds = array<i64: 1, 256>}]} {
    %c0 = arith.constant 0 : index
    %c0_0 = arith.constant 0 : index
    %0 = vector.load %arg1[%c0, %c0_0] : memref<256x32xf32, #tpu.memory_space<vmem>>, vector<256x32xf32>
    %c0_1 = arith.constant 0 : index
    %c0_2 = arith.constant 0 : index
    %1 = vector.load %arg2[%c0_1, %c0_2] : memref<32x32xf32, #tpu.memory_space<vmem>>, vector<32x32xf32>
    %cst = arith.constant dense<0.000000e+00> : vector<256x32xf32>
    %2 = tpu.matmul %0, %1, %cst {dimension_numbers = #tpu.dot_dimension_numbers<[1], [0], [0], [1], [0, 0, 1, 1], [], []>, precision = #tpu.contract_precision<fp32>} : vector<256x32xf32>, vector<32x32xf32>, vector<256x32xf32> -> vector<256x32xf32>
    %c0_3 = arith.constant 0 : index
    %c0_4 = arith.constant 0 : index
    %3 = vector.load %arg3[%c0_3, %c0_4] : memref<1x32xf32, #tpu.memory_space<vmem>>, vector<1x32xf32>
    %4 = vector.broadcast %3 : vector<1x32xf32> to vector<256x32xf32>
    %5 = arith.addf %2, %4 : vector<256x32xf32>
    %cst_5 = arith.constant 0.000000e+00 : f32
    %6 = vector.broadcast %cst_5 : f32 to vector<256x32xf32>
    %7 = arith.maximumf %5, %6 : vector<256x32xf32>
    %c0_6 = arith.constant 0 : index
    %c0_7 = arith.constant 0 : index
    %8 = vector.load %arg4[%c0_6, %c0_7] : memref<1x32xf32, #tpu.memory_space<vmem>>, vector<1x32xf32>
    %cst_8 = arith.constant dense<0.000000e+00> : vector<1x256xf32>
    %9 = tpu.matmul %8, %7, %cst_8 {dimension_numbers = #tpu.dot_dimension_numbers<[1], [1], [0], [0], [0, 0, 1, 0], [], []>, precision = #tpu.contract_precision<fp32>} : vector<1x32xf32>, vector<256x32xf32>, vector<1x256xf32> -> vector<1x256xf32>
    %c0_9 = arith.constant 0 : index
    %c0_10 = arith.constant 0 : index
    %10 = vector.load %arg5[%c0_9, %c0_10] : memref<1x1xf32, #tpu.memory_space<vmem>>, vector<1x1xf32>
    %11 = vector.broadcast %10 : vector<1x1xf32> to vector<1x256xf32>
    %12 = arith.addf %9, %11 : vector<1x256xf32>
    %cst_11 = arith.constant 5.000000e-01 : f32
    %13 = vector.broadcast %cst_11 : f32 to vector<1x256xf32>
    %14 = arith.mulf %13, %12 : vector<1x256xf32>
    %15 = math.tanh %14 : vector<1x256xf32>
    %cst_12 = arith.constant 1.000000e+00 : f32
    %16 = vector.broadcast %cst_12 : f32 to vector<1x256xf32>
    %17 = arith.addf %15, %16 : vector<1x256xf32>
    %cst_13 = arith.constant 5.000000e-01 : f32
    %18 = vector.broadcast %cst_13 : f32 to vector<1x256xf32>
    %19 = arith.mulf %18, %17 : vector<1x256xf32>
    %c0_14 = arith.constant 0 : index
    %c0_15 = arith.constant 0 : index
    %20 = vector.load %arg6[%c0_14, %c0_15] : memref<1x256xf32, #tpu.memory_space<vmem>>, vector<1x256xf32>
    tpu.vector_store %arg6[%c0_14, %c0_15], %19 {strides = array<i32>} : memref<1x256xf32, #tpu.memory_space<vmem>>, vector<1x256xf32>,
    return
  }
  func.func @transform_0(%arg0: i32) -> (i32, i32) {
    %c0_i32 = arith.constant 0 : i32
    %c0_i32_0 = arith.constant 0 : i32
    return %arg0, %c0_i32 : i32, i32
  }
  func.func @transform_1(%arg0: i32) -> (i32, i32) {
    %c0_i32 = arith.constant 0 : i32
    %c0_i32_0 = arith.constant 0 : i32
    %c0_i32_1 = arith.constant 0 : i32
    return %c0_i32, %c0_i32_0 : i32, i32
  }
  func.func @transform_2(%arg0: i32) -> (i32, i32) {
    %c0_i32 = arith.constant 0 : i32
    %c0_i32_0 = arith.constant 0 : i32
    %c0_i32_1 = arith.constant 0 : i32
    return %c0_i32, %c0_i32_0 : i32, i32
  }
  func.func @transform_3(%arg0: i32) -> (i32, i32) {
    %c0_i32 = arith.constant 0 : i32
    %c0_i32_0 = arith.constant 0 : i32
    %c0_i32_1 = arith.constant 0 : i32
    return %c0_i32, %c0_i32_0 : i32, i32
  }
  func.func @transform_4(%arg0: i32) -> (i32, i32) {
    %c0_i32 = arith.constant 0 : i32
    %c0_i32_0 = arith.constant 0 : i32
    %c0_i32_1 = arith.constant 0 : i32
    return %c0_i32, %c0_i32_0 : i32, i32
  }
  func.func @transform_5(%arg0: i32) -> (i32, i32) {
    %c0_i32 = arith.constant 0 : i32
    %c0_i32_0 = arith.constant 0 : i32
    return %c0_i32, %arg0 : i32, i32
  }
}

</mosaic_0001>

<bundles_post_ra>
// kernel: _ranknet_forward_impl.1
= control target key start
LH: loop header
LB: loop body
LE: loop exit
PB: predicated region body
PF: predicated region fallthrough
CT: control target
= control target key end

     0   :  { %s5789_s0 = inlined_call_operand.vmem [shape: f32[512,32], index: 0, kind: input, shape index: {}]   ;;  %s5790_s1 = inlined_call_operand.vmem [shape: f32[32,32], index: 1, kind: input, shape index: {}]   ;;  %s5791_s2 = inlined_call_operand.vmem [shape: f32[1,32], index: 2, kind: input, shape index: {}]   ;;  %s5792_s3 = inlined_call_operand.vmem [shape: f32[1,32], index: 3, kind: input, shape index: {}]   ;;  %s5793_s4 = inlined_call_operand.<no memory space> [shape: f32[1,1], index: 4, kind: input, shape index: {}]   ;;  %s5794_s5 = inlined_call_operand.hbm [shape: f32[1,512], index: 5, kind: output, shape index: {}]  }
   0x1   :  { %v10_v0 = vstv %s5793_s4 }
   0x2   :  { %11 = vst [vmem:[#allocation2] sm:$0x1] %v10_v0 }
   0x3   :  { %12 = vsyncpa [#allocation4], 0 }
   0x4   :  { %14 = vsyncpa [#allocation4 + $0x1], 0  ;;  %s4202_s20 = smov 0   ;;  %s4204_s21 = smov 0  }
   0x5   :  { %s4206_s22 = smov 0   ;;  %s4208_s23 = smov 0  }
   0x6 LB: > { %s3287_s4 = sadd.s32 4294967295, %s4164_s23   ;;  %s3288_s24 = sadd.s32 4294967294, %s4164_s23   ;;  %s4164_s23 = sphi %s4208_s23, %s6094_s23   ;;  %s4160_s22 = sphi %s4206_s22, %s6093_s22   ;;  %s4156_s21 = sphi %s4204_s21, %s6092_s21   ;;  %s4152_s20 = sphi %s4202_s20, %s6091_s20  }
   0x7   : > { %s4225_s25 = sadd.s32 1, %s4164_s23   ;;  %s137_s26 = sadd.s32 1, %s4160_s22 }
   0x8   : > { %s134_s27 = ssub.s32 %s4164_s23, %s4225_s25  ;;  %p147_p0 = scmp.ne.s32.totalorder %s4160_s22, %s4156_s21 }
   0x9   : > { %p135_p1 = scmp.eq.s32.totalorder %s134_s27, 0  ;;  %p148_p2 = scmp.eq.s32.totalorder %s3287_s4, 1 }
   0xa   : > { %p153_p3 = scmp.ne.s32.totalorder %s4156_s21, %s4152_s20  ;;  %p154_p4 = scmp.eq.s32.totalorder %s3288_s24, 1 }
   0xb   : > { %s4235_s28 = scalar_select %p135_p1, %s4160_s22, %s137_s26  }
   0xc   : > { %p4237_p5 = por %p148_p2, %p147_p0  ;;  %p4241_p6 = por %p154_p4, %p153_p3 }
   0xd   : > { %p3291_p7 = scmp.ge.s32.totalorder %s4164_s23, 1  ;;  %p193_p8 = scmp.lt.s32.totalorder %s4164_s23, 3 }
   0xf   : > { %p194_p9 = pnand %p3291_p7, %p193_p8 }
  0x11   : > { %197 = sbr.rel (%p194_p9) target bundleno = 868 (0x364), region = 40 }
  0x16   : > { %v263_v1 = vld [vmem:[%s5790_s1 + $0x18] sm:$0xff]  ;;  %v262_v2 = vld [vmem:[%s5790_s1 + $0x10] sm:$0xff]  ;;  %v261_v3 = vld [vmem:[%s5790_s1 + $0x8] sm:$0xff]  ;;  %s4256_s12 = sshll.u32 %s3287_s4, 5  ;;  %vm271_vm0 = vcmask 261120   ;;  %s218_s6 = sand.u32 1, %s4156_s21  }
  0x17   : > { %v4258_v4 = vand.u32 4294901760, %v263_v1  ;;  %v4260_v5 = vand.u32 4294901760, %v262_v2  ;;  %v4262_v6 = vand.u32 4294901760, %v261_v3  ;;  %v260_v7 = vld [vmem:[%s5790_s1] sm:$0xff]  ;;  %p222_p10 = scmp.lt.s32.totalorder %s4256_s12, 63  ;;  %s3292_s7 = sshll.u32 %s218_s6, 1 }
  0x18   : > { %v4268_v8 = vand.u32 4294901760, %v260_v7  ;;  %s220_s8 = scalar_lea.vmem [#allocation3], %s3292_s7  ;;  %s3227_s13 = scalar_lea.hbm %s5794_s5, %s4256_s12 }
  0x19   : > { %3722 = vmatprep.subr.mxu0 %v4258_v4  ;;  %v4272_v9 = vsub.f32 %v263_v1, %v4258_v4  ;;  %v4275_v10 = vsub.f32 %v262_v2, %v4260_v5  ;;  %v4278_v11 = vsub.f32 %v261_v3, %v4262_v6  ;;  %s223_s15 = scalar_select %p222_p10, %s4256_s12, 63 }
  0x1a   : > { %3723 = vmatpush3.msra.mxu0 %v4258_v4  ;;  %v4283_v12 = vsub.f32 %v260_v7, %v4268_v8  ;;  %s3229_s9 = sshll.u32 %s220_s8, 4  ;;  %s3215_s14 = scalar_lea.sflag [#allocation4], %s218_s6  ;;  %s3230_s9 = int_to_ptr.vmem [resolvable:$true] %s3229_s9 }
  0x1b   : > { %v4286_v13 = vand.u32 4294901760, %v4272_v9  ;;  %3724 = vmatprep.subr.mxu0 %v4260_v5  ;;  %v4290_v14 = vand.u32 4294901760, %v4275_v10  ;;  %v4293_v15 = vand.u32 4294901760, %v4278_v11  ;;  %s3294_s16 = sshll.u32 %s223_s15, 3  ;;  %s4104_s15 = scalar_lea.vmem %s3230_s9, 32 }
  0x1c   : > { %3725 = vmatpush3.msra.mxu0 %v4260_v5  ;;  %v4297_v16 = vand.u32 4294901760, %v4283_v12  ;;  %s4302_s19 = scalar_lea.vmem %s5789_s0, %s3294_s16  ;;  %p4105_p11 = scmp.ne.s32.totalorder %s3230_s9, %s4104_s15 }
  0x1d   : > { %v785_v17 = vsub.f32 %v4272_v9, %v4286_v13  ;;  %v792_v18 = vsub.f32 %v4275_v10, %v4290_v14  ;;  %3726 = vmatprep.subr.mxu0 %v4262_v6  ;;  %v799_v19 = vsub.f32 %v4278_v11, %v4293_v15  ;;  %v228_v20 = vld [vmem:[%s4302_s19] sm:$0xff]  ;;  %v229_v21 = vld [vmem:[%s4302_s19 + $0x8] sm:$0xff]  ;;  %v230_v22 = vld [vmem:[%s4302_s19 + $0x10] sm:$0xff]  ;;  %s4168_s16 = smov [#allocation3]  }
  0x1e   : > { %3727 = vmatpush3.msra.mxu0 %v4262_v6  ;;  %v806_v23 = vsub.f32 %v4283_v12, %v4297_v16  ;;  %v273_v24 = vsel %vm271_vm0, %v228_v20, 0  ;;  %v276_v25 = vsel %vm271_vm0, %v229_v21, 0  ;;  %v279_v26 = vsel %vm271_vm0, %v230_v22, 0  ;;  %v231_v27 = vld [vmem:[%s4302_s19 + $0x18] sm:$0xff]  ;;  %v232_v28 = vld [vmem:[%s4302_s19 + $0x20] sm:$0xff]  ;;  %v233_v29 = vld [vmem:[%s4302_s19 + $0x28] sm:$0xff]  ;;  %p4106_p12 = pnand %p4105_p11, %p4237_p5 }
  0x1f   : > { %v786_v30 = vand.u32 4294901760, %v785_v17  ;;  %v793_v31 = vand.u32 4294901760, %v792_v18  ;;  %v800_v32 = vand.u32 4294901760, %v799_v19  ;;  %3728 = vmatprep.subr.mxu0 %v4268_v8  ;;  %v4324_v33 = vand.u32 4294901760, %v273_v24  ;;  %v234_v38 = vld [vmem:[%s4302_s19 + $0x30] sm:$0xff]  ;;  %v235_v39 = vld [vmem:[%s4302_s19 + $0x38] sm:$0xff] }
  0x20   : > { %3729 = vmatpush3.msra.mxu0 %v4268_v8  ;;  %v807_v34 = vand.u32 4294901760, %v806_v23  ;;  %v4327_v35 = vand.u32 4294901760, %v276_v25  ;;  %v4329_v36 = vand.u32 4294901760, %v279_v26  ;;  %v282_v37 = vsel %vm271_vm0, %v231_v27, 0  ;;  %v236_v0 = vld [vmem:[%s4302_s19 + $0x40] sm:$0xff]  ;;  %v237_v17 = vld [vmem:[%s4302_s19 + $0x48] sm:$0xff]  ;;  %p4107_p13 = pneg %p4106_p12 }
  0x21   : > { %3778 = vmatprep.subr.mxu1 %v786_v30  ;;  %v4335_v40 = vsub.f32 %v273_v24, %v4324_v33  ;;  %3786 = vmatprep.mubr.f32.mxu1 %v4324_v33  ;;  %v4338_v41 = vand.u32 4294901760, %v282_v37  ;;  %v285_v42 = vsel %vm271_vm0, %v232_v28, 0  ;;  %v288_v43 = vsel %vm271_vm0, %v233_v29, 0  ;;  %v238_v22 = vld [vmem:[%s4302_s19 + $0x50] sm:$0xff]  ;;  %v240_v27 = vld [vmem:[%s4302_s19 + $0x60] sm:$0xff]  ;;  %s4108_s17 = sshll.u32 %s4168_s16, 4  ;;  %s4109_s17 = int_to_ptr.vmem [resolvable:$false] %s4108_s17 }
  0x22   : > { %5915 = vst [vmem:[#allocation6_spill] sm:$0xff] %v4327_v35  ;;  %5916 = vst [vmem:[#allocation7_spill] sm:$0xff] %v4329_v36  ;;  %3779 = vmatpush3.msra.mxu1 %v786_v30  ;;  %3834 = vmatprep.subr.mxu0 %v4272_v9  ;;  %v4344_v44 = vsub.f32 %v276_v25, %v4327_v35  ;;  %v4347_v45 = vsub.f32 %v279_v26, %v4329_v36  ;;  %v4349_v46 = vand.u32 4294901760, %v285_v42  ;;  %v239_v26 = vld [vmem:[%s4302_s19 + $0x58] sm:$0xff]  ;;  %s4110_s18 = scalar_lea.vmem %s4109_s17, 64  ;;  %p4111_p0 = scmp.lt.s32.totalorder %s3230_s9, %s4109_s17 }
  0x23   : > { %5917 = vst [vmem:[#allocation8_spill] sm:$0xff] %v4338_v41  ;;  %v4351_v47 = vand.u32 4294901760, %v288_v43  ;;  %3780 = vmatprep.subr.mxu1 %v793_v31  ;;  %v5808_v48 = vand.u32 4294901760, %v4335_v40  ;;  %v4355_v49 = vsub.f32 %v282_v37, %v4338_v41  ;;  %v291_v50 = vsel %vm271_vm0, %v234_v38, 0  ;;  %p4112_p1 = scmp.lt.s32.totalorder %s4110_s18, %s4104_s15 }
  0x24   : > { %5918 = vst [vmem:[#allocation9_spill] sm:$0xff] %v4349_v46  ;;  %v294_v51 = vsel %vm271_vm0, %v235_v39, 0  ;;  %3781 = vmatpush3.msra.mxu1 %v793_v31  ;;  %v5806_v52 = vand.u32 4294901760, %v4344_v44  ;;  %v5804_v53 = vand.u32 4294901760, %v4347_v45  ;;  %v4362_v54 = vsub.f32 %v285_v42, %v4349_v46  ;;  %v241_v39 = vld [vmem:[%s4302_s19 + $0x68] sm:$0xff] }
  0x25   : > { %5919 = vst [vmem:[#allocation10_spill] sm:$0xff] %v4351_v47  ;;  %v4365_v55 = vsub.f32 %v288_v43, %v4351_v47  ;;  %3782 = vmatprep.subr.mxu1 %v800_v32  ;;  %v440_v56 = vsub.f32 %v4335_v40, %v5808_v48  ;;  %v5803_v57 = vand.u32 4294901760, %v4355_v49  ;;  %v4371_v58 = vand.u32 4294901760, %v291_v50  ;;  %p4113_p2 = por %p4112_p1, %p4111_p0 }
  0x26   : > { %v4373_v59 = vand.u32 4294901760, %v294_v51  ;;  %3783 = vmatpush3.msra.mxu1 %v800_v32  ;;  %v450_v60 = vsub.f32 %v4344_v44, %v5806_v52  ;;  %v460_v61 = vsub.f32 %v4347_v45, %v5804_v53  ;;  %v5802_v62 = vand.u32 4294901760, %v4362_v54 }
  0x27   : > { %5920 = vst [vmem:[#allocation11_spill] sm:$0xff] %v4371_v58  ;;  %v5801_v63 = vand.u32 4294901760, %v4365_v55  ;;  %3784 = vmatprep.subr.mxu1 %v807_v34  ;;  %v441_v1 = vand.u32 4294901760, %v440_v56  ;;  %v470_v2 = vsub.f32 %v4355_v49, %v5803_v57  ;;  %v4388_v3 = vsub.f32 %v291_v50, %v4371_v58  ;;  %p4114_p3 = pnand %p4113_p2, %p4107_p13 }
  0x28   : > { %5921 = vst [vmem:[#allocation12_spill] sm:$0xff] %v4373_v59  ;;  %v4391_v7 = vsub.f32 %v294_v51, %v4373_v59  ;;  %3785 = vmatpush3.msra.mxu1 %v807_v34  ;;  %v451_v18 = vand.u32 4294901760, %v450_v60  ;;  %v461_v19 = vand.u32 4294901760, %v460_v61  ;;  %v480_v20 = vsub.f32 %v4362_v54, %v5802_v62  ;;  %v242_v51 = vld [vmem:[%s4302_s19 + $0x70] sm:$0xff] }
  0x29   : > { %v490_v21 = vsub.f32 %v4365_v55, %v5801_v63  ;;  %3730 = vmatprep.mubr.f32.mxu0 %v441_v1  ;;  %3787 = vmatmul.mubr.f32.vlgmr.msra.gmra.mxu1 %v4327_v35  ;;  %v5800_v23 = vand.u32 4294901760, %v4388_v3  ;;  %v297_v25 = vsel %vm271_vm0, %v236_v0, 0  ;;  %v471_v28 = vand.u32 4294901760, %v470_v2 }
  0x2a   : > { %v5799_v24 = vand.u32 4294901760, %v4391_v7  ;;  %3731 = vmatmul.mubr.f32.vlgmr.msra.gmra.mxu0 %v451_v18  ;;  %3890 = vmatprep.subr.mxu1 %v4258_v4  ;;  %v481_v29 = vand.u32 4294901760, %v480_v20  ;;  %v4408_v30 = vand.u32 4294901760, %v297_v25  ;;  %v300_v31 = vsel %vm271_vm0, %v237_v17, 0 }
  0x2b   : > { %3835 = vmatpush3.msra.mxu0 %v4272_v9  ;;  %3891 = vmatpush3.msra.mxu1 %v4258_v4  ;;  %v491_v32 = vand.u32 4294901760, %v490_v21  ;;  %v500_v34 = vsub.f32 %v4388_v3, %v5800_v23  ;;  %v4416_v37 = vand.u32 4294901760, %v300_v31  ;;  %v303_v38 = vsel %vm271_vm0, %v238_v22, 0 }
  0x2c   : > { %5922 = vst [vmem:[#allocation13_spill] sm:$0xff] %v4408_v30  ;;  %3733 = vmatprep.mubr.f32.mxu0 %v461_v19  ;;  %3789 = vmatprep.mubr.f32.mxu1 %v4329_v36  ;;  %v4422_v42 = vsub.f32 %v297_v25, %v4408_v30  ;;  %v4424_v43 = vand.u32 4294901760, %v303_v38  ;;  %v306_v9 = vsel %vm271_vm0, %v239_v26, 0  ;;  %v309_v50 = vsel %vm271_vm0, %v240_v27, 0  ;;  %v243_v19 = vld [vmem:[%s4302_s19 + $0x78] sm:$0xff] }
  0x2d   : > { %5923 = vst [vmem:[#allocation14_spill] sm:$0xff] %v4416_v37  ;;  %3790 = vmatmul.mubr.f32.gmra.mxu1 %v4338_v41  ;;  %v501_v56 = vand.u32 4294901760, %v500_v34  ;;  %v510_v60 = vsub.f32 %v4391_v7, %v5799_v24  ;;  %3836 = vmatprep.subr.mxu0 %v4275_v10  ;;  %v4435_v61 = vsub.f32 %v300_v31, %v4416_v37  ;;  %v4437_v0 = vand.u32 4294901760, %v306_v9  ;;  %v248_v24 = vld [vmem:[%s4302_s19 + $0xa0] sm:$0xff] }
  0x2e   : > { %5924 = vst [vmem:[#allocation15_spill] sm:$0xff] %v4424_v43  ;;  %3734 = vmatmul.mubr.f32.gmra.mxu0 %v471_v28  ;;  %3792 = vmatprep.mubr.f32.mxu1 %v4349_v46  ;;  %v5797_v1 = vand.u32 4294901760, %v4422_v42  ;;  %v4442_v2 = vsub.f32 %v303_v38, %v4424_v43  ;;  %v4444_v17 = vand.u32 4294901760, %v309_v50  ;;  %v312_v18 = vsel %vm271_vm0, %v241_v39, 0  ;;  %v244_v38 = vld [vmem:[%s4302_s19 + $0x80] sm:$0xff]  ;;  %v258_v46 = vld [vmem:[%s4302_s19 + $0xf0] sm:$0xff] }
  0x2f   : > { %5925 = vst [vmem:[#allocation16_spill] sm:$0xff] %v4437_v0  ;;  %3736 = vmatprep.mubr.f32.mxu0 %v481_v29  ;;  %v5796_v20 = vand.u32 4294901760, %v4435_v61  ;;  %3837 = vmatpush3.msra.mxu0 %v4275_v10  ;;  %v4451_v21 = vsub.f32 %v306_v9, %v4437_v0  ;;  %v4453_v22 = vand.u32 4294901760, %v312_v18  ;;  %v315_v25 = vsel %vm271_vm0, %v242_v51, 0 }
  0x30   : > { %5926 = vst [vmem:[#allocation17_spill] sm:$0xff] %v4444_v17  ;;  %v520_v26 = vsub.f32 %v4422_v42, %v5797_v1  ;;  %3892 = vmatprep.subr.mxu1 %v4260_v5  ;;  %v5795_v27 = vand.u32 4294901760, %v4442_v2  ;;  %v4462_v28 = vsub.f32 %v309_v50, %v4444_v17  ;;  %v4464_v29 = vand.u32 4294901760, %v315_v25  ;;  %3838 = vmatprep.subr.mxu0 %v4278_v11 }
  0x31   : > { %5927 = vst [vmem:[#allocation18_spill] sm:$0xff] %v4453_v22  ;;  %3793 = vmatmul.mubr.f32.gmra.mxu1 %v4351_v47  ;;  %v5798_v10 = vand.u32 4294901760, %v4451_v21  ;;  %v4470_v31 = vsub.f32 %v312_v18, %v4453_v22  ;;  %v318_v34 = vsel %vm271_vm0, %v243_v19, 0  ;;  %3839 = vmatpush3.msra.mxu0 %v4278_v11  ;;  %v511_v39 = vand.u32 4294901760, %v510_v60  ;;  %v245_v18 = vld [vmem:[%s4302_s19 + $0x88] sm:$0xff]  ;;  %v246_v19 = vld [vmem:[%s4302_s19 + $0x90] sm:$0xff] }
  0x32   : > { %5928 = vst [vmem:[#allocation19_spill] sm:$0xff] %v4464_v29  ;;  %3737 = vmatmul.mubr.f32.gmra.mxu0 %v491_v32  ;;  %3795 = vmatprep.mubr.f32.mxu1 %v4371_v58  ;;  %v530_v9 = vsub.f32 %v4435_v61, %v5796_v20  ;;  %v4480_v50 = vsub.f32 %v315_v25, %v4464_v29  ;;  %v521_v51 = vand.u32 4294901760, %v520_v26  ;;  %v5805_v32 = vand.u32 4294901760, %v4462_v28  ;;  %v255_v58 = vld [vmem:[%s4302_s19 + $0xd8] sm:$0xff]  ;;  %v257_v47 = vld [vmem:[%s4302_s19 + $0xe8] sm:$0xff] }
  0x33   : > { %3739 = vmatprep.mubr.f32.mxu0 %v501_v56  ;;  %3893 = vmatpush3.msra.mxu1 %v4260_v5  ;;  %v540_v11 = vsub.f32 %v4442_v2, %v5795_v27  ;;  %v4487_v60 = vand.u32 4294901760, %v318_v34  ;;  %v550_v25 = vsub.f32 %v4451_v21, %v5798_v10  ;;  %v321_v56 = vsel %vm271_vm0, %v244_v38, 0  ;;  %v247_v10 = vld [vmem:[%s4302_s19 + $0x98] sm:$0xff] }
  0x34   : > { %3894 = vmatprep.subr.mxu1 %v4262_v6  ;;  %3840 = vmatprep.subr.mxu0 %v4283_v12  ;;  %v5807_v26 = vand.u32 4294901760, %v4470_v31  ;;  %v5809_v27 = vand.u32 4294901760, %v4480_v50  ;;  %v4503_v1 = vand.u32 4294901760, %v321_v56  ;;  %v531_v38 = vand.u32 4294901760, %v530_v9 }
  0x35   : > { %5929 = vst [vmem:[#allocation20_spill] sm:$0xff] %v4487_v60  ;;  %3796 = vmatmul.mubr.f32.gmra.mxu1 %v4373_v59  ;;  %v4501_v20 = vsub.f32 %v318_v34, %v4487_v60  ;;  %3841 = vmatpush3.msra.mxu0 %v4283_v12  ;;  %v324_v23 = vsel %vm271_vm0, %v245_v18, 0  ;;  %v327_v63 = vsel %vm271_vm0, %v246_v19, 0  ;;  %v541_v62 = vand.u32 4294901760, %v540_v11  ;;  %v249_v12 = vld [vmem:[%s4302_s19 + $0xa8] sm:$0xff] }
  0x36   : > { %5930 = vst [vmem:[#allocation21_spill] sm:$0xff] %v4503_v1  ;;  %3740 = vmatmul.mubr.f32.gmra.mxu0 %v511_v39  ;;  %3798 = vmatprep.mubr.f32.mxu1 %v4408_v30  ;;  %v560_v34 = vsub.f32 %v4462_v28, %v5805_v32  ;;  %v4515_v57 = vsub.f32 %v321_v56, %v4503_v1  ;;  %v4517_v53 = vand.u32 4294901760, %v324_v23  ;;  %v250_v39 = vld [vmem:[%s4302_s19 + $0xb0] sm:$0xff]  ;;  %v4522_v9 = vand.u32 4294901760, %v327_v63 }
  0x37   : > { %3742 = vmatprep.mubr.f32.mxu0 %v521_v51  ;;  %3895 = vmatpush3.msra.mxu1 %v4262_v6  ;;  %v330_v18 = vsel %vm271_vm0, %v247_v10, 0  ;;  %v333_v51 = vsel %vm271_vm0, %v248_v24, 0  ;;  %v551_v11 = vand.u32 4294901760, %v550_v25  ;;  %v570_v19 = vsub.f32 %v4470_v31, %v5807_v26 }
  0x38   : > { %5931 = vst [vmem:[#allocation22_spill] sm:$0xff] %v4517_v53  ;;  %5932 = vst [vmem:[#allocation23_spill] sm:$0xff] %v4522_v9  ;;  %3896 = vmatprep.subr.mxu1 %v4268_v8  ;;  %3946 = vmatprep.subr.mxu0 %v4286_v13  ;;  %v580_v56 = vsub.f32 %v4480_v50, %v5809_v27  ;;  %v4538_v24 = vsub.f32 %v324_v23, %v4517_v53  ;;  %v4540_v32 = vand.u32 4294901760, %v330_v18  ;;  %v252_v23 = vld [vmem:[%s4302_s19 + $0xc0] sm:$0xff] }
  0x39   : > { %3799 = vmatmul.mubr.f32.gmra.mxu1 %v4416_v37  ;;  %v336_v25 = vsel %vm271_vm0, %v249_v12, 0  ;;  %v339_v52 = vsel %vm271_vm0, %v250_v39, 0  ;;  %v561_v26 = vand.u32 4294901760, %v560_v34  ;;  %v4546_v27 = vsub.f32 %v327_v63, %v4522_v9 }
  0x3a   : > { %3743 = vmatmul.mubr.f32.gmra.mxu0 %v531_v38  ;;  %3801 = vmatprep.mubr.f32.mxu1 %v4424_v43  ;;  %v4548_v10 = vand.u32 4294901760, %v333_v51  ;;  %v251_v38 = vld [vmem:[%s4302_s19 + $0xb8] sm:$0xff]  ;;  %v571_v12 = vand.u32 4294901760, %v570_v19  ;;  %v581_v39 = vand.u32 4294901760, %v580_v56  ;;  %v4557_v34 = vand.u32 4294901760, %v339_v52 }
  0x3b   : > { %3745 = vmatprep.mubr.f32.mxu0 %v541_v62  ;;  %3897 = vmatpush3.msra.mxu1 %v4268_v8  ;;  %v4555_v62 = vand.u32 4294901760, %v336_v25  ;;  %v5935_v63 = vand.u32 4294901760, %v4501_v20  ;;  %v5828_v43 = vand.u32 4294901760, %v4538_v24  ;;  %v4565_v37 = vsub.f32 %v330_v18, %v4540_v32 }
  0x3c   : > { %5933 = vst [vmem:[#allocation24_spill] sm:$0xff] %v4548_v10  ;;  %4002 = vmatprep.subr.mxu1 %v4258_v4  ;;  %5934 = vst [vmem:[#allocation25_spill] sm:$0xff] %v4557_v34  ;;  %v342_v19 = vsel %vm271_vm0, %v251_v38, 0  ;;  %v5936_v56 = vand.u32 4294901760, %v4515_v57  ;;  %v345_v30 = vsel %vm271_vm0, %v252_v23, 0 }
  0x3d   : > { %3802 = vmatmul.mubr.f32.gmra.mxu1 %v4437_v0  ;;  %v590_v48 = vsub.f32 %v4501_v20, %v5935_v63  ;;  %v253_v63 = vld [vmem:[%s4302_s19 + $0xc8] sm:$0xff]  ;;  %v4579_v18 = vsub.f32 %v336_v25, %v4555_v62  ;;  %v4584_v38 = vand.u32 4294901760, %v342_v19  ;;  %v610_v23 = vsub.f32 %v4538_v24, %v5828_v43 }
  0x3e   : > { %3746 = vmatmul.mubr.f32.gmra.mxu0 %v551_v11  ;;  %3804 = vmatprep.mubr.f32.mxu1 %v4444_v17  ;;  %v600_v0 = vsub.f32 %v4515_v57, %v5936_v56  ;;  %v4573_v17 = vsub.f32 %v333_v51, %v4548_v10  ;;  %v254_v56 = vld [vmem:[%s4302_s19 + $0xd0] sm:$0xff]  ;;  %v4592_v25 = vand.u32 4294901760, %v345_v30 }
  0x3f   : > { %3748 = vmatprep.mubr.f32.mxu0 %v561_v26  ;;  %v4582_v26 = vsub.f32 %v339_v52, %v4557_v34  ;;  %v591_v51 = vand.u32 4294901760, %v590_v48  ;;  %v5937_v52 = vand.u32 4294901760, %v4546_v27  ;;  %v351_v48 = vsel %vm271_vm0, %v254_v56, 0 }
  0x41   : > { %3805 = vmatmul.mubr.f32.gmra.mxu1 %v4453_v22  ;;  %v601_v22 = vand.u32 4294901760, %v600_v0  ;;  %v620_v59 = vsub.f32 %v4546_v27, %v5937_v52  ;;  %v4605_v0 = vsub.f32 %v342_v19, %v4584_v38  ;;  %v611_v52 = vand.u32 4294901760, %v610_v23 }
  0x42   : > { %3749 = vmatmul.mubr.f32.gmra.mxu0 %v571_v12  ;;  %3807 = vmatprep.mubr.f32.mxu1 %v4464_v29  ;;  %v348_v29 = vsel %vm271_vm0, %v253_v63, 0  ;;  %v5938_v63 = vand.u32 4294901760, %v4565_v37  ;;  %v4613_v12 = vsub.f32 %v345_v30, %v4592_v25  ;;  %v5939_v19 = vand.u32 4294901760, %v4573_v17 }
  0x43   : > { %3751 = vmatprep.mubr.f32.mxu0 %v581_v39  ;;  %v256_v39 = vld [vmem:[%s4302_s19 + $0xe0] sm:$0xff]  ;;  %v4615_v43 = vand.u32 4294901760, %v348_v29  ;;  %v621_v11 = vand.u32 4294901760, %v620_v59  ;;  %v5940_v30 = vand.u32 4294901760, %v4579_v18 }
  0x44   : > { %v630_v56 = vsub.f32 %v4565_v37, %v5938_v63  ;;  %v357_v23 = vsel %vm271_vm0, %v256_v39, 0 }
  0x45   : > { %3808 = vmatmul.mubr.f32.gmra.mxu1 %v4487_v60  ;;  %v640_v60 = vsub.f32 %v4573_v17, %v5939_v19  ;;  %v650_v63 = vsub.f32 %v4579_v18, %v5940_v30  ;;  %v360_v19 = vsel %vm271_vm0, %v257_v47, 0 }
  0x46   : > { %3752 = vmatmul.mubr.f32.gmra.mxu0 %v591_v51  ;;  %3810 = vmatprep.mubr.f32.mxu1 %v4503_v1  ;;  %v4620_v51 = vand.u32 4294901760, %v351_v48  ;;  %v354_v1 = vsel %vm271_vm0, %v255_v58, 0  ;;  %v631_v58 = vand.u32 4294901760, %v630_v56 }
  0x47   : > { %3754 = vmatprep.mubr.f32.mxu0 %v601_v22  ;;  %v5941_v22 = vand.u32 4294901760, %v4582_v26  ;;  %v4639_v41 = vand.u32 4294901760, %v354_v1  ;;  %v641_v30 = vand.u32 4294901760, %v640_v60  ;;  %v651_v56 = vand.u32 4294901760, %v650_v63 }
  0x48   : > { %v4642_v36 = vsub.f32 %v351_v48, %v4620_v51  ;;  %v5943_v60 = vand.u32 4294901760, %v4613_v12  ;;  %v4661_v48 = vand.u32 4294901760, %v360_v19 }
  0x49   : > { %3811 = vmatmul.mubr.f32.gmra.mxu1 %v4517_v53  ;;  %v660_v59 = vsub.f32 %v4582_v26, %v5941_v22  ;;  %v4637_v53 = vsub.f32 %v348_v29, %v4615_v43  ;;  %v4644_v22 = vand.u32 4294901760, %v357_v23  ;;  %v5942_v29 = vand.u32 4294901760, %v4605_v0 }
  0x4a   : > { %3755 = vmatmul.mubr.f32.gmra.mxu0 %v611_v52  ;;  %3813 = vmatprep.mubr.f32.mxu1 %v4522_v9  ;;  %v363_v52 = vsel %vm271_vm0, %v258_v46, 0  ;;  %v259_v9 = vld [vmem:[%s4302_s19 + $0xf8] sm:$0xff]  ;;  %v4659_v46 = vsub.f32 %v354_v1, %v4639_v41  ;;  %v4677_v63 = vsub.f32 %v360_v19, %v4661_v48 }
  0x4b   : > { %3757 = vmatprep.mubr.f32.mxu0 %v621_v11  ;;  %v661_v39 = vand.u32 4294901760, %v660_v59  ;;  %v670_v35 = vsub.f32 %v4605_v0, %v5942_v29  ;;  %v680_v11 = vsub.f32 %v4613_v12, %v5943_v60  ;;  %v5851_v47 = vand.u32 4294901760, %v4637_v53 }
  0x4c   : > { %v4665_v59 = vsub.f32 %v357_v23, %v4644_v22  ;;  %v366_v29 = vsel %vm271_vm0, %v259_v9, 0  ;;  %v5944_v9 = vand.u32 4294901760, %v4642_v36 }
  0x4d   : > { %3814 = vmatmul.mubr.f32.gmra.mxu1 %v4540_v32  ;;  %v671_v60 = vand.u32 4294901760, %v670_v35  ;;  %v690_v1 = vsub.f32 %v4637_v53, %v5851_v47  ;;  %v4679_v23 = vand.u32 4294901760, %v366_v29 }
  0x4e   : > { %3758 = vmatmul.mubr.f32.gmra.mxu0 %v631_v58  ;;  %3816 = vmatprep.mubr.f32.mxu1 %v4548_v10  ;;  %v4667_v58 = vand.u32 4294901760, %v363_v52  ;;  %v681_v10 = vand.u32 4294901760, %v680_v11  ;;  %v700_v35 = vsub.f32 %v4642_v36, %v5944_v9  ;;  %v5853_v11 = vand.u32 4294901760, %v4677_v63 }
  0x4f   : > { %3760 = vmatprep.mubr.f32.mxu0 %v641_v30  ;;  %v5852_v30 = vand.u32 4294901760, %v4659_v46  ;;  %v691_v19 = vand.u32 4294901760, %v690_v1  ;;  %v4695_v47 = vsub.f32 %v366_v29, %v4679_v23 }
  0x50   : > { %v701_v9 = vand.u32 4294901760, %v700_v35 }
  0x51   : > { %3817 = vmatmul.mubr.f32.gmra.mxu1 %v4555_v62  ;;  %v749_v29 = vand.u32 4294901760, %v4695_v47 }
  0x52   : > { %3761 = vmatmul.mubr.f32.gmra.mxu0 %v651_v56  ;;  %3819 = vmatprep.mubr.f32.mxu1 %v4557_v34  ;;  %v719_v56 = vand.u32 4294901760, %v4665_v59  ;;  %v4686_v34 = vsub.f32 %v363_v52, %v4667_v58 }
  0x53   : > { %3763 = vmatprep.mubr.f32.mxu0 %v661_v39  ;;  %v710_v39 = vsub.f32 %v4659_v46, %v5852_v30  ;;  %v730_v30 = vsub.f32 %v4677_v63, %v5853_v11 }
  0x54   : > { %v720_v52 = vsub.f32 %v4665_v59, %v719_v56 }
  0x55   : > { %3820 = vmatmul.mubr.f32.gmra.mxu1 %v4584_v38  ;;  %v711_v1 = vand.u32 4294901760, %v710_v39  ;;  %v750_v39 = vsub.f32 %v4695_v47, %v749_v29 }
  0x56   : > { %3764 = vmatmul.mubr.f32.gmra.mxu0 %v671_v60  ;;  %3822 = vmatprep.mubr.f32.mxu1 %v4592_v25  ;;  %v739_v60 = vand.u32 4294901760, %v4686_v34 }
  0x57   : > { %3766 = vmatprep.mubr.f32.mxu0 %v681_v10  ;;  %v721_v10 = vand.u32 4294901760, %v720_v52  ;;  %v5945_v52 = vand.u32 4294901760, %v4335_v40 }
  0x58   : > { %v740_v35 = vsub.f32 %v4686_v34, %v739_v60 }
  0x59   : > { %3823 = vmatmul.mubr.f32.gmra.mxu1 %v4615_v43 }
  0x5a   : > { %3767 = vmatmul.mubr.f32.gmra.mxu0 %v691_v19  ;;  %3825 = vmatprep.mubr.f32.mxu1 %v4620_v51  ;;  %v731_v19 = vand.u32 4294901760, %v730_v30  ;;  %v741_v11 = vand.u32 4294901760, %v740_v35  ;;  %v5946_v30 = vand.u32 4294901760, %v4344_v44 }
  0x5b   : > { %3769 = vmatprep.mubr.f32.mxu0 %v701_v9  ;;  %v751_v9 = vand.u32 4294901760, %v750_v39 }
  0x5d   : > { %3826 = vmatmul.mubr.f32.gmra.mxu1 %v4639_v41 }
  0x5e   : > { %3770 = vmatmul.mubr.f32.gmra.mxu0 %v711_v1  ;;  %3828 = vmatprep.mubr.f32.mxu1 %v4644_v22  ;;  %v5948_v1 = vand.u32 4294901760, %v4355_v49 }
  0x5f   : > { %3772 = vmatprep.mubr.f32.mxu0 %v721_v10  ;;  %v5993_v10 = vld [vmem:[#allocation25_spill] sm:$0xff] }
  0x61   : > { %3829 = vmatmul.mubr.f32.gmra.mxu1 %v4661_v48 }
  0x62   : > { %3773 = vmatmul.mubr.f32.gmra.mxu0 %v731_v19  ;;  %3831 = vmatprep.mubr.f32.mxu1 %v4667_v58 }
  0x63   : > { %3775 = vmatprep.mubr.f32.mxu0 %v741_v11  ;;  %v5947_v11 = vand.u32 4294901760, %v4347_v45 }
  0x65   : > { %3832 = vmatmul.mubr.f32.gmra.mxu1 %v4679_v23 }
  0x66   : > { %3776 = vmatmul.mubr.f32.gmra.mxu0 %v751_v9  ;;  %3898 = vmatprep.mubr.f32.mxu1 %v5945_v52 }
  0x67   : > { %3842 = vmatprep.mubr.f32.mxu0 %v4335_v40  ;;  %v5949_v40 = vand.u32 4294901760, %v4362_v54 }
  0x69   : > { %3899 = vmatmul.mubr.f32.vlgmr.msra.gmra.mxu1 %v5946_v30 }
  0x6a   : > { %3843 = vmatmul.mubr.f32.vlgmr.msra.gmra.mxu0 %v4344_v44  ;;  %4003 = vmatpush3.msra.mxu1 %v4258_v4  ;;  %v5950_v4 = vand.u32 4294901760, %v4365_v55  ;;  %v5957_v44 = vand.u32 4294901760, %v4462_v28 }
  0x6b   : > { %3947 = vmatpush3.msra.mxu0 %v4286_v13  ;;  %3845 = vmatprep.mubr.f32.mxu0 %v4347_v45  ;;  %v5951_v13 = vand.u32 4294901760, %v4388_v3  ;;  %v5959_v45 = vand.u32 4294901760, %v4480_v50 }
  0x6c   : > { %3901 = vmatprep.mubr.f32.mxu1 %v5947_v11  ;;  %3948 = vmatprep.subr.mxu0 %v4290_v14 }
  0x6d   : > { %3902 = vmatmul.mubr.f32.gmra.mxu1 %v5948_v1  ;;  %3949 = vmatpush3.msra.mxu0 %v4290_v14  ;;  %v5953_v14 = vand.u32 4294901760, %v4422_v42 }
  0x6e   : > { %3846 = vmatmul.mubr.f32.gmra.mxu0 %v4355_v49  ;;  %3904 = vmatprep.mubr.f32.mxu1 %v5949_v40  ;;  %v5960_v49 = vand.u32 4294901760, %v4501_v20 }
  0x6f   : > { %3848 = vmatprep.mubr.f32.mxu0 %v4362_v54  ;;  %4004 = vmatprep.subr.mxu1 %v4260_v5  ;;  %v5961_v54 = vand.u32 4294901760, %v4515_v57 }
  0x70   : > { %4005 = vmatpush3.msra.mxu1 %v4260_v5  ;;  %3950 = vmatprep.subr.mxu0 %v4293_v15  ;;  %v5952_v5 = vand.u32 4294901760, %v4391_v7 }
  0x71   : > { %3905 = vmatmul.mubr.f32.gmra.mxu1 %v5950_v4  ;;  %3951 = vmatpush3.msra.mxu0 %v4293_v15  ;;  %v5955_v15 = vand.u32 4294901760, %v4442_v2 }
  0x72   : > { %3849 = vmatmul.mubr.f32.gmra.mxu0 %v4365_v55  ;;  %3907 = vmatprep.mubr.f32.mxu1 %v5951_v13  ;;  %v5962_v55 = vand.u32 4294901760, %v4538_v24 }
  0x73   : > { %3851 = vmatprep.mubr.f32.mxu0 %v4388_v3  ;;  %4006 = vmatprep.subr.mxu1 %v4262_v6  ;;  %v5963_v3 = vand.u32 4294901760, %v4546_v27 }
  0x74   : > { %4007 = vmatpush3.msra.mxu1 %v4262_v6  ;;  %3952 = vmatprep.subr.mxu0 %v4297_v16  ;;  %v5954_v6 = vand.u32 4294901760, %v4435_v61 }
  0x75   : > { %3908 = vmatmul.mubr.f32.gmra.mxu1 %v5952_v5  ;;  %3953 = vmatpush3.msra.mxu0 %v4297_v16  ;;  %v5956_v16 = vand.u32 4294901760, %v4451_v21 }
  0x76   : > { %3852 = vmatmul.mubr.f32.gmra.mxu0 %v4391_v7  ;;  %3910 = vmatprep.mubr.f32.mxu1 %v5953_v14  ;;  %v5964_v7 = vand.u32 4294901760, %v4565_v37 }
  0x77   : > { %3854 = vmatprep.mubr.f32.mxu0 %v4422_v42  ;;  %4008 = vmatprep.subr.mxu1 %v4268_v8  ;;  %v5965_v42 = vand.u32 4294901760, %v4573_v17 }
  0x78   : > { %4009 = vmatpush3.msra.mxu1 %v4268_v8  ;;  %v5958_v8 = vand.u32 4294901760, %v4470_v31 }
  0x79   : > { %3911 = vmatmul.mubr.f32.gmra.mxu1 %v5954_v6 }
  0x7a   : > { %3855 = vmatmul.mubr.f32.gmra.mxu0 %v4435_v61  ;;  %3913 = vmatprep.mubr.f32.mxu1 %v5955_v15  ;;  %v5967_v61 = vand.u32 4294901760, %v4582_v26 }
  0x7b   : > { %3857 = vmatprep.mubr.f32.mxu0 %v4442_v2  ;;  %v5968_v2 = vand.u32 4294901760, %v4605_v0 }
  0x7d   : > { %3914 = vmatmul.mubr.f32.gmra.mxu1 %v5956_v16 }
  0x7e   : > { %3858 = vmatmul.mubr.f32.gmra.mxu0 %v4451_v21  ;;  %3916 = vmatprep.mubr.f32.mxu1 %v5957_v44  ;;  %v5972_v21 = vand.u32 4294901760, %v4659_v46 }
  0x7f   : > { %3860 = vmatprep.mubr.f32.mxu0 %v4462_v28  ;;  %v5976_v28 = vld [vmem:[#allocation8_spill] sm:$0xff] }
  0x81   : > { %3917 = vmatmul.mubr.f32.gmra.mxu1 %v5958_v8 }
  0x82   : > { %3861 = vmatmul.mubr.f32.gmra.mxu0 %v4470_v31  ;;  %3919 = vmatprep.mubr.f32.mxu1 %v5959_v45  ;;  %v5977_v31 = vld [vmem:[#allocation9_spill] sm:$0xff] }
  0x83   : > { %3863 = vmatprep.mubr.f32.mxu0 %v4480_v50  ;;  %v5978_v50 = vld [vmem:[#allocation10_spill] sm:$0xff] }
  0x85   : > { %3920 = vmatmul.mubr.f32.gmra.mxu1 %v5960_v49 }
  0x86   : > { %3864 = vmatmul.mubr.f32.gmra.mxu0 %v4501_v20  ;;  %3922 = vmatprep.mubr.f32.mxu1 %v5961_v54  ;;  %v5971_v20 = vand.u32 4294901760, %v4642_v36 }
  0x87   : > { %3866 = vmatprep.mubr.f32.mxu0 %v4515_v57  ;;  %v5966_v57 = vand.u32 4294901760, %v4579_v18 }
  0x89   : > { %3923 = vmatmul.mubr.f32.gmra.mxu1 %v5962_v55 }
  0x8a   : > { %3867 = vmatmul.mubr.f32.gmra.mxu0 %v4538_v24  ;;  %3925 = vmatprep.mubr.f32.mxu1 %v5963_v3  ;;  %v5980_v24 = vld [vmem:[#allocation12_spill] sm:$0xff] }
  0x8b   : > { %3869 = vmatprep.mubr.f32.mxu0 %v4546_v27  ;;  %v5973_v27 = vand.u32 4294901760, %v4677_v63 }
  0x8d   : > { %3926 = vmatmul.mubr.f32.gmra.mxu1 %v5964_v7 }
  0x8e   : > { %3870 = vmatmul.mubr.f32.gmra.mxu0 %v4565_v37  ;;  %3928 = vmatprep.mubr.f32.mxu1 %v5965_v42  ;;  %v5969_v37 = vand.u32 4294901760, %v4613_v12 }
  0x8f   : > { %3872 = vmatprep.mubr.f32.mxu0 %v4573_v17  ;;  %v5970_v17 = vand.u32 4294901760, %v4637_v53 }
  0x91   : > { %3929 = vmatmul.mubr.f32.gmra.mxu1 %v5966_v57 }
  0x92   : > { %3873 = vmatmul.mubr.f32.gmra.mxu0 %v4579_v18  ;;  %3931 = vmatprep.mubr.f32.mxu1 %v5967_v61  ;;  %v5982_v18 = vld [vmem:[#allocation14_spill] sm:$0xff] }
  0x93   : > { %3875 = vmatprep.mubr.f32.mxu0 %v4582_v26  ;;  %v5983_v26 = vld [vmem:[#allocation15_spill] sm:$0xff] }
  0x95   : > { %3932 = vmatmul.mubr.f32.gmra.mxu1 %v5968_v2 }
  0x96   : > { %3876 = vmatmul.mubr.f32.gmra.mxu0 %v4605_v0  ;;  %3934 = vmatprep.mubr.f32.mxu1 %v5969_v37  ;;  %v5985_v0 = vld [vmem:[#allocation17_spill] sm:$0xff] }
  0x97   : > { %3878 = vmatprep.mubr.f32.mxu0 %v4613_v12  ;;  %v5984_v12 = vld [vmem:[#allocation16_spill] sm:$0xff] }
  0x99   : > { %3935 = vmatmul.mubr.f32.gmra.mxu1 %v5970_v17 }
  0x9a   : > { %3879 = vmatmul.mubr.f32.gmra.mxu0 %v4637_v53  ;;  %3937 = vmatprep.mubr.f32.mxu1 %v5971_v20  ;;  %v5975_v53 = vld [vmem:[#allocation7_spill] sm:$0xff] }
  0x9b   : > { %3881 = vmatprep.mubr.f32.mxu0 %v4642_v36  ;;  %v5974_v36 = vld [vmem:[#allocation6_spill] sm:$0xff] }
  0x9d   : > { %3938 = vmatmul.mubr.f32.gmra.mxu1 %v5972_v21 }
  0x9e   : > { %3882 = vmatmul.mubr.f32.gmra.mxu0 %v4659_v46  ;;  %3940 = vmatprep.mubr.f32.mxu1 %v719_v56  ;;  %v5987_v46 = vld [vmem:[#allocation19_spill] sm:$0xff]  ;;  %v5990_v56 = vld [vmem:[#allocation22_spill] sm:$0xff] }
  0x9f   : > { %3884 = vmatprep.mubr.f32.mxu0 %v4665_v59  ;;  %v5989_v59 = vld [vmem:[#allocation21_spill] sm:$0xff] }
  0xa1   : > { %3941 = vmatmul.mubr.f32.gmra.mxu1 %v5973_v27 }
  0xa2   : > { %3885 = vmatmul.mubr.f32.gmra.mxu0 %v4677_v63  ;;  %3943 = vmatprep.mubr.f32.mxu1 %v739_v60  ;;  %v5988_v63 = vld [vmem:[#allocation20_spill] sm:$0xff]  ;;  %v5991_v60 = vld [vmem:[#allocation23_spill] sm:$0xff] }
  0xa3   : > { %3887 = vmatprep.mubr.f32.mxu0 %v4686_v34  ;;  %v5981_v34 = vld [vmem:[#allocation13_spill] sm:$0xff] }
  0xa5   : > { %3944 = vmatmul.mubr.f32.gmra.mxu1 %v749_v29  ;;  %v5992_v29 = vld [vmem:[#allocation24_spill] sm:$0xff] }
  0xa6   : > { %3888 = vmatmul.mubr.f32.gmra.mxu0 %v4695_v47  ;;  %4010 = vmatprep.mubr.f32.mxu1 %v4324_v33  ;;  %v5986_v47 = vld [vmem:[#allocation18_spill] sm:$0xff] }
  0xa7   : > { %3954 = vmatprep.mubr.f32.mxu0 %v4324_v33  ;;  %v5979_v33 = vld [vmem:[#allocation11_spill] sm:$0xff] }
  0xa9   : > { %4011 = vmatmul.mubr.f32.vlgmr.msra.gmra.mxu1 %v5974_v36 }
  0xaa   : > { %3955 = vmatmul.mubr.f32.vlgmr.msra.gmra.mxu0 %v5974_v36  ;;  %4013 = vmatprep.mubr.f32.mxu1 %v5975_v53 }
  0xab   : > { %3957 = vmatprep.mubr.f32.mxu0 %v5975_v53 }
  0xad   : > { %4014 = vmatmul.mubr.f32.gmra.mxu1 %v5976_v28 }
  0xae   : > { %3958 = vmatmul.mubr.f32.gmra.mxu0 %v5976_v28  ;;  %4016 = vmatprep.mubr.f32.mxu1 %v5977_v31 }
  0xaf   : > { %3960 = vmatprep.mubr.f32.mxu0 %v5977_v31 }
  0xb1   : > { %4017 = vmatmul.mubr.f32.gmra.mxu1 %v5978_v50 }
  0xb2   : > { %3961 = vmatmul.mubr.f32.gmra.mxu0 %v5978_v50  ;;  %4019 = vmatprep.mubr.f32.mxu1 %v5979_v33 }
  0xb3   : > { %3963 = vmatprep.mubr.f32.mxu0 %v5979_v33 }
  0xb5   : > { %4020 = vmatmul.mubr.f32.gmra.mxu1 %v5980_v24 }
  0xb6   : > { %3964 = vmatmul.mubr.f32.gmra.mxu0 %v5980_v24  ;;  %4022 = vmatprep.mubr.f32.mxu1 %v5981_v34 }
  0xb7   : > { %3966 = vmatprep.mubr.f32.mxu0 %v5981_v34 }
  0xb9   : > { %4023 = vmatmul.mubr.f32.gmra.mxu1 %v5982_v18 }
  0xba   : > { %3967 = vmatmul.mubr.f32.gmra.mxu0 %v5982_v18  ;;  %4025 = vmatprep.mubr.f32.mxu1 %v5983_v26 }
  0xbb   : > { %3969 = vmatprep.mubr.f32.mxu0 %v5983_v26 }
  0xbd   : > { %4026 = vmatmul.mubr.f32.gmra.mxu1 %v5984_v12 }
  0xbe   : > { %3970 = vmatmul.mubr.f32.gmra.mxu0 %v5984_v12  ;;  %4028 = vmatprep.mubr.f32.mxu1 %v5985_v0 }
  0xbf   : > { %3972 = vmatprep.mubr.f32.mxu0 %v5985_v0 }
  0xc1   : > { %4029 = vmatmul.mubr.f32.gmra.mxu1 %v5986_v47 }
  0xc2   : > { %3973 = vmatmul.mubr.f32.gmra.mxu0 %v5986_v47  ;;  %4031 = vmatprep.mubr.f32.mxu1 %v5987_v46 }
  0xc3   : > { %3975 = vmatprep.mubr.f32.mxu0 %v5987_v46 }
  0xc5   : > { %4032 = vmatmul.mubr.f32.gmra.mxu1 %v5988_v63 }
  0xc6   : > { %3976 = vmatmul.mubr.f32.gmra.mxu0 %v5988_v63  ;;  %4034 = vmatprep.mubr.f32.mxu1 %v5989_v59 }
  0xc7   : > { %3978 = vmatprep.mubr.f32.mxu0 %v5989_v59 }
  0xc9   : > { %4035 = vmatmul.mubr.f32.gmra.mxu1 %v5990_v56 }
  0xca   : > { %3979 = vmatmul.mubr.f32.gmra.mxu0 %v5990_v56  ;;  %4037 = vmatprep.mubr.f32.mxu1 %v5991_v60 }
  0xcb   : > { %3981 = vmatprep.mubr.f32.mxu0 %v5991_v60 }
  0xcd   : > { %4038 = vmatmul.mubr.f32.gmra.mxu1 %v4540_v32 }
  0xce   : > { %3982 = vmatmul.mubr.f32.gmra.mxu0 %v4540_v32  ;;  %4040 = vmatprep.mubr.f32.mxu1 %v5992_v29 }
  0xcf   : > { %3984 = vmatprep.mubr.f32.mxu0 %v5992_v29 }
  0xd1   : > { %4041 = vmatmul.mubr.f32.gmra.mxu1 %v4555_v62 }
  0xd2   : > { %3985 = vmatmul.mubr.f32.gmra.mxu0 %v4555_v62  ;;  %4043 = vmatprep.mubr.f32.mxu1 %v5993_v10 }
  0xd3   : > { %3987 = vmatprep.mubr.f32.mxu0 %v5993_v10 }
  0xd5   : > { %4044 = vmatmul.mubr.f32.gmra.mxu1 %v4584_v38 }
  0xd6   : > { %3988 = vmatmul.mubr.f32.gmra.mxu0 %v4584_v38  ;;  %4046 = vmatprep.mubr.f32.mxu1 %v4592_v25 }
  0xd7   : > { %3990 = vmatprep.mubr.f32.mxu0 %v4592_v25 }
  0xd9   : > { %4047 = vmatmul.mubr.f32.gmra.mxu1 %v4615_v43 }
  0xda   : > { %3991 = vmatmul.mubr.f32.gmra.mxu0 %v4615_v43  ;;  %4049 = vmatprep.mubr.f32.mxu1 %v4620_v51 }
  0xdb   : > { %3993 = vmatprep.mubr.f32.mxu0 %v4620_v51 }
  0xdd   : > { %4050 = vmatmul.mubr.f32.gmra.mxu1 %v4639_v41 }
  0xde   : > { %3994 = vmatmul.mubr.f32.gmra.mxu0 %v4639_v41  ;;  %4052 = vmatprep.mubr.f32.mxu1 %v4644_v22  ;;  %v4895_v41 = vld [vmem:[%s5791_s2] ss:$0 sm:$0xff] }
  0xdf   : > { %3996 = vmatprep.mubr.f32.mxu0 %v4644_v22 }
  0xe1   : > { %4053 = vmatmul.mubr.f32.gmra.mxu1 %v4661_v48 }
  0xe2   : > { %3997 = vmatmul.mubr.f32.gmra.mxu0 %v4661_v48  ;;  %4055 = vmatprep.mubr.f32.mxu1 %v4667_v58 }
  0xe3   : > { %3999 = vmatprep.mubr.f32.mxu0 %v4667_v58 }
  0xe5   : > { %4056 = vmatmul.mubr.f32.gmra.mxu1 %v4679_v23 }
  0xe6   : > { %4000 = vmatmul.mubr.f32.gmra.mxu0 %v4679_v23 }
  0xe9   : > { %v3788_v43 = vpop.f32.mrf.mxu1 }
  0xea   : > { %v3732_v32 = vpop.f32.mrf.mxu0 }
  0xeb   : > { %v454_v62 = vadd.f32 %v3732_v32, %v4895_v41  ;;  %v844_v38 = vpop.f32.mrf.mxu1 }
  0xec   : > { %v443_v25 = vpop.f32.mrf.mxu0 }
  0xed   : > { %v4898_v51 = vadd.f32 %v3788_v43, %v454_v62  ;;  %v444_v22 = vadd.f32 %v4895_v41, %v443_v25  ;;  %v3791_v48 = vpop.f32.mrf.mxu1 }
  0xee   : > { %v3735_v58 = vpop.f32.mrf.mxu0 }
  0xef   : > { %v4901_v35 = vadd.f32 %v844_v38, %v444_v22  ;;  %v474_v23 = vadd.f32 %v3735_v58, %v4895_v41  ;;  %v856_v19 = vpop.f32.mrf.mxu1 }
  0xf0   : > { %v463_v39 = vpop.f32.mrf.mxu0 }
  0xf1   : > { %v4904_v9 = vadd.f32 %v3791_v48, %v474_v23  ;;  %v464_v52 = vadd.f32 %v4895_v41, %v463_v39  ;;  %v3794_v30 = vpop.f32.mrf.mxu1 }
  0xf2   : > { %v3738_v11 = vpop.f32.mrf.mxu0 }
  0xf3   : > { %v4907_v1 = vadd.f32 %v856_v19, %v464_v52  ;;  %v494_v40 = vadd.f32 %v3738_v11, %v4895_v41  ;;  %v868_v4 = vpop.f32.mrf.mxu1 }
  0xf4   : > { %v483_v13 = vpop.f32.mrf.mxu0 }
  0xf5   : > { %v4910_v5 = vadd.f32 %v3794_v30, %v494_v40  ;;  %v484_v14 = vadd.f32 %v4895_v41, %v483_v13  ;;  %v3797_v6 = vpop.f32.mrf.mxu1 }
  0xf6   : > { %v3741_v15 = vpop.f32.mrf.mxu0 }
  0xf7   : > { %v4913_v16 = vadd.f32 %v868_v4, %v484_v14  ;;  %v514_v44 = vadd.f32 %v3741_v15, %v4895_v41  ;;  %v880_v8 = vpop.f32.mrf.mxu1 }
  0xf8   : > { %v503_v45 = vpop.f32.mrf.mxu0 }
  0xf9   : > { %v4916_v49 = vadd.f32 %v3797_v6, %v514_v44  ;;  %v504_v54 = vadd.f32 %v4895_v41, %v503_v45  ;;  %v3800_v55 = vpop.f32.mrf.mxu1 }
  0xfa   : > { %v3744_v3 = vpop.f32.mrf.mxu0 }
  0xfb   : > { %v4919_v7 = vadd.f32 %v880_v8, %v504_v54  ;;  %v534_v42 = vadd.f32 %v3744_v3, %v4895_v41  ;;  %v892_v57 = vpop.f32.mrf.mxu1 }
  0xfc   : > { %v523_v61 = vpop.f32.mrf.mxu0 }
  0xfd   : > { %v4922_v2 = vadd.f32 %v3800_v55, %v534_v42  ;;  %v524_v37 = vadd.f32 %v4895_v41, %v523_v61  ;;  %v3803_v17 = vpop.f32.mrf.mxu1 }
  0xfe   : > { %v3747_v20 = vpop.f32.mrf.mxu0 }
  0xff   : > { %v4925_v21 = vadd.f32 %v892_v57, %v524_v37  ;;  %v554_v27 = vadd.f32 %v3747_v20, %v4895_v41  ;;  %v904_v36 = vpop.f32.mrf.mxu1 }
 0x100   : > { %v543_v53 = vpop.f32.mrf.mxu0 }
 0x101   : > { %v4928_v28 = vadd.f32 %v3803_v17, %v554_v27  ;;  %v544_v31 = vadd.f32 %v4895_v41, %v543_v53  ;;  %v3806_v50 = vpop.f32.mrf.mxu1 }
 0x102   : > { %v3750_v33 = vpop.f32.mrf.mxu0 }
 0x103   : > { %v4931_v24 = vadd.f32 %v904_v36, %v544_v31  ;;  %v574_v34 = vadd.f32 %v3750_v33, %v4895_v41  ;;  %v916_v18 = vpop.f32.mrf.mxu1 }
 0x104   : > { %v563_v26 = vpop.f32.mrf.mxu0 }
 0x105   : > { %v4934_v12 = vadd.f32 %v3806_v50, %v574_v34  ;;  %v564_v0 = vadd.f32 %v4895_v41, %v563_v26  ;;  %v3809_v47 = vpop.f32.mrf.mxu1 }
 0x106   : > { %v3753_v46 = vpop.f32.mrf.mxu0 }
 0x107   : > { %v4937_v63 = vadd.f32 %v916_v18, %v564_v0  ;;  %v594_v59 = vadd.f32 %v3753_v46, %v4895_v41  ;;  %v928_v56 = vpop.f32.mrf.mxu1 }
 0x108   : > { %v583_v60 = vpop.f32.mrf.mxu0 }
 0x109   : > { %v4940_v29 = vadd.f32 %v3809_v47, %v594_v59  ;;  %v584_v10 = vadd.f32 %v4895_v41, %v583_v60  ;;  %v3812_v43 = vpop.f32.mrf.mxu1 }
 0x10a   : > { %v3756_v32 = vpop.f32.mrf.mxu0 }
 0x10b   : > { %v4943_v62 = vadd.f32 %v928_v56, %v584_v10  ;;  %v614_v38 = vadd.f32 %v3756_v32, %v4895_v41  ;;  %v940_v25 = vpop.f32.mrf.mxu1 }
 0x10c   : > { %v603_v22 = vpop.f32.mrf.mxu0 }
 0x10d   : > { %v4946_v48 = vadd.f32 %v3812_v43, %v614_v38  ;;  %v604_v58 = vadd.f32 %v4895_v41, %v603_v22  ;;  %v3815_v23 = vpop.f32.mrf.mxu1 }
 0x10e   : > { %v3759_v19 = vpop.f32.mrf.mxu0 }
 0x10f   : > { %v4949_v39 = vadd.f32 %v940_v25, %v604_v58  ;;  %v634_v52 = vadd.f32 %v3759_v19, %v4895_v41  ;;  %v952_v30 = vpop.f32.mrf.mxu1 }
 0x110   : > { %v623_v11 = vpop.f32.mrf.mxu0 }
 0x111   : > { %v4952_v40 = vadd.f32 %v3815_v23, %v634_v52  ;;  %v624_v4 = vadd.f32 %v4895_v41, %v623_v11  ;;  %v3818_v13 = vpop.f32.mrf.mxu1 }
 0x112   : > { %v3762_v14 = vpop.f32.mrf.mxu0 }
 0x113   : > { %v4955_v6 = vadd.f32 %v952_v30, %v624_v4  ;;  %v654_v15 = vadd.f32 %v3762_v14, %v4895_v41  ;;  %v964_v44 = vpop.f32.mrf.mxu1 }
 0x114   : > { %v643_v8 = vpop.f32.mrf.mxu0 }
 0x115   : > { %v4958_v45 = vadd.f32 %v3818_v13, %v654_v15  ;;  %v644_v54 = vadd.f32 %v4895_v41, %v643_v8  ;;  %v3821_v55 = vpop.f32.mrf.mxu1 }
 0x116   : > { %v3765_v3 = vpop.f32.mrf.mxu0 }
 0x117   : > { %v4961_v42 = vadd.f32 %v964_v44, %v644_v54  ;;  %v674_v57 = vadd.f32 %v3765_v3, %v4895_v41  ;;  %v976_v61 = vpop.f32.mrf.mxu1 }
 0x118   : > { %v663_v37 = vpop.f32.mrf.mxu0 }
 0x119   : > { %v4964_v17 = vadd.f32 %v3821_v55, %v674_v57  ;;  %v664_v20 = vadd.f32 %v4895_v41, %v663_v37  ;;  %v3824_v27 = vpop.f32.mrf.mxu1 }
 0x11a   : > { %v3768_v36 = vpop.f32.mrf.mxu0 }
 0x11b   : > { %v4967_v53 = vadd.f32 %v976_v61, %v664_v20  ;;  %v694_v31 = vadd.f32 %v3768_v36, %v4895_v41  ;;  %v988_v50 = vpop.f32.mrf.mxu1 }
 0x11c   : > { %v683_v33 = vpop.f32.mrf.mxu0 }
 0x11d   : > { %v4970_v34 = vadd.f32 %v3824_v27, %v694_v31  ;;  %v684_v18 = vadd.f32 %v4895_v41, %v683_v33  ;;  %v3827_v26 = vpop.f32.mrf.mxu1 }
 0x11e   : > { %v3771_v0 = vpop.f32.mrf.mxu0 }
 0x11f   : > { %v4973_v47 = vadd.f32 %v988_v50, %v684_v18  ;;  %v714_v46 = vadd.f32 %v3771_v0, %v4895_v41  ;;  %v1000_v59 = vpop.f32.mrf.mxu1 }
 0x120   : > { %v703_v56 = vpop.f32.mrf.mxu0 }
 0x121   : > { %v4976_v60 = vadd.f32 %v3827_v26, %v714_v46  ;;  %v704_v10 = vadd.f32 %v4895_v41, %v703_v56  ;;  %v3830_v43 = vpop.f32.mrf.mxu1 }
 0x122   : > { %v3774_v32 = vpop.f32.mrf.mxu0 }
 0x123   : > { %v4979_v38 = vadd.f32 %v1000_v59, %v704_v10  ;;  %v734_v25 = vadd.f32 %v3774_v32, %v4895_v41  ;;  %v1012_v22 = vpop.f32.mrf.mxu1 }
 0x124   : > { %v723_v58 = vpop.f32.mrf.mxu0 }
 0x125   : > { %v4982_v23 = vadd.f32 %v3830_v43, %v734_v25  ;;  %v724_v19 = vadd.f32 %v4895_v41, %v723_v58  ;;  %v3833_v52 = vpop.f32.mrf.mxu1 }
 0x126   : > { %v3777_v30 = vpop.f32.mrf.mxu0 }
 0x127   : > { %v4985_v11 = vadd.f32 %v1012_v22, %v724_v19  ;;  %v754_v4 = vadd.f32 %v3777_v30, %v4895_v41  ;;  %v1024_v13 = vpop.f32.mrf.mxu1 }
 0x128   : > { %v743_v14 = vpop.f32.mrf.mxu0 }
 0x129   : > { %v4988_v15 = vadd.f32 %v3833_v52, %v754_v4  ;;  %v744_v44 = vadd.f32 %v4895_v41, %v743_v14  ;;  %v3900_v8 = vpop.f32.mrf.mxu1 }
 0x12a   : > { %v3844_v54 = vpop.f32.mrf.mxu0 }
 0x12b   : > { %v4991_v55 = vadd.f32 %v1024_v13, %v744_v44  ;;  %v1118_v3 = vadd.f32 %v3844_v54, %v4898_v51  ;;  %v1404_v57 = vpop.f32.mrf.mxu1 }
 0x12c   : > { %v1110_v61 = vpop.f32.mrf.mxu0 }
 0x12d   : > { %v4994_v37 = vadd.f32 %v3900_v8, %v1118_v3  ;;  %v1111_v20 = vadd.f32 %v1110_v61, %v4901_v35  ;;  %v3903_v27 = vpop.f32.mrf.mxu1 }
 0x12e   : > { %v3847_v36 = vpop.f32.mrf.mxu0 }
 0x12f   : > { %v4997_v31 = vadd.f32 %v1404_v57, %v1111_v20  ;;  %v1132_v50 = vadd.f32 %v3847_v36, %v4904_v9  ;;  %v1420_v33 = vpop.f32.mrf.mxu1 }
 0x130   : > { %v1124_v41 = vpop.f32.mrf.mxu0 }
 0x131   : > { %v5000_v18 = vadd.f32 %v3903_v27, %v1132_v50  ;;  %v1125_v26 = vadd.f32 %v1124_v41, %v4907_v1  ;;  %v3906_v0 = vpop.f32.mrf.mxu1 }
 0x132   : > { %v3850_v51 = vpop.f32.mrf.mxu0 }
 0x133   : > { %v5003_v46 = vadd.f32 %v1420_v33, %v1125_v26  ;;  %v1146_v59 = vadd.f32 %v3850_v51, %v4910_v5  ;;  %v1436_v56 = vpop.f32.mrf.mxu1 }
 0x134   : > { %v1138_v35 = vpop.f32.mrf.mxu0 }
 0x135   : > { %v5006_v10 = vadd.f32 %v3906_v0, %v1146_v59  ;;  %v1139_v43 = vadd.f32 %v1138_v35, %v4913_v16  ;;  %v3909_v32 = vpop.f32.mrf.mxu1 }
 0x136   : > { %v3853_v9 = vpop.f32.mrf.mxu0 }
 0x137   : > { %v5009_v25 = vadd.f32 %v1436_v56, %v1139_v43  ;;  %v1160_v22 = vadd.f32 %v3853_v9, %v4916_v49  ;;  %v1452_v58 = vpop.f32.mrf.mxu1 }
 0x138   : > { %v1152_v1 = vpop.f32.mrf.mxu0 }
 0x139   : > { %v5012_v19 = vadd.f32 %v3909_v32, %v1160_v22  ;;  %v1153_v52 = vadd.f32 %v1152_v1, %v4919_v7  ;;  %v3912_v30 = vpop.f32.mrf.mxu1 }
 0x13a   : > { %v3856_v5 = vpop.f32.mrf.mxu0 }
 0x13b   : > { %v5015_v4 = vadd.f32 %v1452_v58, %v1153_v52  ;;  %v1174_v13 = vadd.f32 %v3856_v5, %v4922_v2  ;;  %v1468_v14 = vpop.f32.mrf.mxu1 }
 0x13c   : > { %v1166_v16 = vpop.f32.mrf.mxu0 }
 0x13d   : > { %v5018_v44 = vadd.f32 %v3912_v30, %v1174_v13  ;;  %v1167_v8 = vadd.f32 %v1166_v16, %v4925_v21  ;;  %v3915_v54 = vpop.f32.mrf.mxu1 }
 0x13e   : > { %v3859_v49 = vpop.f32.mrf.mxu0 }
 0x13f   : > { %v5021_v3 = vadd.f32 %v1468_v14, %v1167_v8  ;;  %v1188_v57 = vadd.f32 %v3859_v49, %v4928_v28  ;;  %v1484_v61 = vpop.f32.mrf.mxu1 }
 0x140   : > { %v1180_v7 = vpop.f32.mrf.mxu0 }
 0x141   : > { %v5024_v20 = vadd.f32 %v3915_v54, %v1188_v57  ;;  %v1181_v27 = vadd.f32 %v1180_v7, %v4931_v24  ;;  %v3918_v36 = vpop.f32.mrf.mxu1 }
 0x142   : > { %v3862_v2 = vpop.f32.mrf.mxu0 }
 0x143   : > { %v5027_v50 = vadd.f32 %v1484_v61, %v1181_v27  ;;  %v1202_v33 = vadd.f32 %v3862_v2, %v4934_v12  ;;  %v1500_v41 = vpop.f32.mrf.mxu1 }
 0x144   : > { %v1194_v21 = vpop.f32.mrf.mxu0 }
 0x145   : > { %v5030_v26 = vadd.f32 %v3918_v36, %v1202_v33  ;;  %v1195_v0 = vadd.f32 %v1194_v21, %v4937_v63  ;;  %v3921_v51 = vpop.f32.mrf.mxu1 }
 0x146   : > { %v3865_v28 = vpop.f32.mrf.mxu0 }
 0x147   : > { %v5033_v59 = vadd.f32 %v1500_v41, %v1195_v0  ;;  %v1216_v56 = vadd.f32 %v3865_v28, %v4940_v29  ;;  %v1516_v35 = vpop.f32.mrf.mxu1 }
 0x148   : > { %v1208_v24 = vpop.f32.mrf.mxu0 }
 0x149   : > { %v5036_v43 = vadd.f32 %v3921_v51, %v1216_v56  ;;  %v1209_v32 = vadd.f32 %v1208_v24, %v4943_v62  ;;  %v3924_v9 = vpop.f32.mrf.mxu1 }
 0x14a   : > { %v3868_v12 = vpop.f32.mrf.mxu0 }
 0x14b   : > { %v5039_v22 = vadd.f32 %v1516_v35, %v1209_v32  ;;  %v1230_v58 = vadd.f32 %v3868_v12, %v4946_v48  ;;  %v1532_v1 = vpop.f32.mrf.mxu1 }
 0x14c   : > { %v1222_v63 = vpop.f32.mrf.mxu0 }
 0x14d   : > { %v5042_v52 = vadd.f32 %v3924_v9, %v1230_v58  ;;  %v1223_v30 = vadd.f32 %v1222_v63, %v4949_v39  ;;  %v3927_v5 = vpop.f32.mrf.mxu1 }
 0x14e   : > { %v3871_v29 = vpop.f32.mrf.mxu0 }
 0x14f   : > { %v5045_v13 = vadd.f32 %v1532_v1, %v1223_v30  ;;  %v1244_v14 = vadd.f32 %v3871_v29, %v4952_v40  ;;  %v1548_v16 = vpop.f32.mrf.mxu1 }
 0x150   : > { %v1236_v62 = vpop.f32.mrf.mxu0 }
 0x151   : > { %v5048_v8 = vadd.f32 %v3927_v5, %v1244_v14  ;;  %v1237_v54 = vadd.f32 %v1236_v62, %v4955_v6  ;;  %v3930_v49 = vpop.f32.mrf.mxu1 }
 0x152   : > { %v3874_v48 = vpop.f32.mrf.mxu0 }
 0x153   : > { %v5051_v57 = vadd.f32 %v1548_v16, %v1237_v54  ;;  %v1258_v61 = vadd.f32 %v3874_v48, %v4958_v45  ;;  %v1564_v7 = vpop.f32.mrf.mxu1 }
 0x154   : > { %v1250_v39 = vpop.f32.mrf.mxu0 }
 0x155   : > { %v5054_v27 = vadd.f32 %v3930_v49, %v1258_v61  ;;  %v1251_v36 = vadd.f32 %v1250_v39, %v4961_v42  ;;  %v3933_v2 = vpop.f32.mrf.mxu1 }
 0x156   : > { %v3877_v40 = vpop.f32.mrf.mxu0 }
 0x157   : > { %v5057_v33 = vadd.f32 %v1564_v7, %v1251_v36  ;;  %v1272_v41 = vadd.f32 %v3877_v40, %v4964_v17  ;;  %v1580_v21 = vpop.f32.mrf.mxu1 }
 0x158   : > { %v1264_v6 = vpop.f32.mrf.mxu0 }
 0x159   : > { %v5060_v0 = vadd.f32 %v3933_v2, %v1272_v41  ;;  %v1265_v51 = vadd.f32 %v1264_v6, %v4967_v53  ;;  %v3936_v28 = vpop.f32.mrf.mxu1 }
 0x15a   : > { %v3880_v45 = vpop.f32.mrf.mxu0 }
 0x15b   : > { %v5063_v56 = vadd.f32 %v1580_v21, %v1265_v51  ;;  %v1286_v35 = vadd.f32 %v3880_v45, %v4970_v34  ;;  %v1596_v24 = vpop.f32.mrf.mxu1  ;;  %v2218_v51 = vld [vmem:[%s5792_s3] sm:$0x1] }
 0x15c   : > { %v1278_v42 = vpop.f32.mrf.mxu0 }
 0x15d   : > { %v5066_v32 = vadd.f32 %v3936_v28, %v1286_v35  ;;  %v1279_v9 = vadd.f32 %v1278_v42, %v4973_v47  ;;  %v3939_v12 = vpop.f32.mrf.mxu1 }
 0x15e   : > { %v3883_v17 = vpop.f32.mrf.mxu0 }
 0x15f   : > { %v5069_v58 = vadd.f32 %v1596_v24, %v1279_v9  ;;  %v1300_v1 = vadd.f32 %v3883_v17, %v4976_v60  ;;  %v1612_v63 = vpop.f32.mrf.mxu1  ;;  %v2230_v24 = vsel %vm271_vm0, %v2218_v51, 0 }
 0x160   : > { %v1292_v53 = vpop.f32.mrf.mxu0  ;;  %v5102_v42 = vand.u32 4294901760, %v2230_v24 }
 0x161   : > { %v5072_v30 = vadd.f32 %v3939_v12, %v1300_v1  ;;  %v1293_v5 = vadd.f32 %v1292_v53, %v4979_v38  ;;  %v3942_v29 = vpop.f32.mrf.mxu1 }
 0x162   : > { %v3886_v34 = vpop.f32.mrf.mxu0  ;;  %5996 = vst [vmem:[#allocation8_spill] sm:$0xff] %v5102_v42  ;;  %v5108_v1 = vsub.f32 %v2230_v24, %v5102_v42  ;;  %3584 = vmatprep.mubr.f32.mxu1 %v5102_v42 }
 0x163   : > { %v5075_v14 = vadd.f32 %v1612_v63, %v1293_v5  ;;  %v1314_v16 = vadd.f32 %v3886_v34, %v4982_v23  ;;  %v1628_v62 = vpop.f32.mrf.mxu1 }
 0x164   : > { %v1306_v47 = vpop.f32.mrf.mxu0  ;;  %5997 = vst [vmem:[#allocation9_spill] sm:$0xff] %v5108_v1 }
 0x165   : > { %v5078_v54 = vadd.f32 %v3942_v29, %v1314_v16  ;;  %v1307_v49 = vadd.f32 %v1306_v47, %v4985_v11  ;;  %v5081_v48 = vpop.f32.mrf.mxu1  ;;  %v5115_v29 = vand.u32 4294901760, %v5108_v1 }
 0x166   : > { %v5083_v60 = vpop.f32.mrf.mxu0 }
 0x167   : > { %v5085_v61 = vadd.f32 %v1628_v62, %v1307_v49  ;;  %v5087_v7 = vpop.f32.mrf.mxu1  ;;  %5999 = vst [vmem:[#allocation11_spill] sm:$0xff] %v5115_v29  ;;  %v2428_v47 = vsub.f32 %v5108_v1, %v5115_v29 }
 0x168   : > { %v5089_v38 = vpop.f32.mrf.mxu0 }
 0x169   : > { %v4012_v39 = vpop.f32.mrf.mxu1 }
 0x16a   : > { %v3956_v36 = vpop.f32.mrf.mxu0 }
 0x16b   : > { %v1742_v23 = vadd.f32 %v3956_v36, %v4994_v37  ;;  %v1996_v2 = vpop.f32.mrf.mxu1 }
 0x16c   : > { %v1735_v40 = vpop.f32.mrf.mxu0 }
 0x16d   : > { %v5092_v41 = vadd.f32 %v4012_v39, %v1742_v23  ;;  %v1736_v11 = vadd.f32 %v1735_v40, %v4997_v31  ;;  %v4015_v21 = vpop.f32.mrf.mxu1  ;;  %v5125_v23 = vand.u32 4294901760, %v2428_v47 }
 0x16e   : > { %v3959_v6 = vpop.f32.mrf.mxu0 }
 0x16f   : > { %5994 = vst [vmem:[#allocation6_spill] sm:$0xff] %v5092_v41  ;;  %v5098_v28 = vadd.f32 %v1996_v2, %v1736_v11  ;;  %v1754_v45 = vadd.f32 %v3959_v6, %v5000_v18  ;;  %v2008_v35 = vpop.f32.mrf.mxu1  ;;  %6000 = vst [vmem:[#allocation12_spill] sm:$0xff] %v5125_v23  ;;  %3550 = vmatprep.mubr.f32.mxu0 %v5125_v23 }
 0x170   : > { %v1747_v37 = vpop.f32.mrf.mxu0 }
 0x171   : > { %5995 = vst [vmem:[#allocation7_spill] sm:$0xff] %v5098_v28  ;;  %v5104_v9 = vadd.f32 %v4015_v21, %v1754_v45  ;;  %v1748_v31 = vadd.f32 %v1747_v37, %v5003_v46  ;;  %v4018_v12 = vpop.f32.mrf.mxu1 }
 0x172   : > { %v3962_v17 = vpop.f32.mrf.mxu0 }
 0x173   : > { %v5111_v63 = vadd.f32 %v2008_v35, %v1748_v31  ;;  %v1766_v18 = vadd.f32 %v3962_v17, %v5006_v10  ;;  %v2020_v53 = vpop.f32.mrf.mxu1 }
 0x174   : > { %v1759_v5 = vpop.f32.mrf.mxu0 }
 0x175   : > { %5998 = vst [vmem:[#allocation10_spill] sm:$0xff] %v5111_v63  ;;  %v5117_v34 = vadd.f32 %v4018_v12, %v1766_v18  ;;  %v1760_v46 = vadd.f32 %v1759_v5, %v5009_v25  ;;  %v4021_v16 = vpop.f32.mrf.mxu1 }
 0x176   : > { %v3965_v62 = vpop.f32.mrf.mxu0 }
 0x177   : > { %v5122_v49 = vadd.f32 %v2020_v53, %v1760_v46  ;;  %v1778_v39 = vadd.f32 %v3965_v62, %v5012_v19  ;;  %v2032_v36 = vpop.f32.mrf.mxu1 }
 0x178   : > { %v1771_v10 = vpop.f32.mrf.mxu0 }
 0x179   : > { %v5127_v2 = vadd.f32 %v4021_v16, %v1778_v39  ;;  %v1772_v40 = vadd.f32 %v1771_v10, %v5015_v4  ;;  %v4024_v11 = vpop.f32.mrf.mxu1 }
 0x17a   : > { %v3968_v21 = vpop.f32.mrf.mxu0 }
 0x17b   : > { %v5131_v25 = vadd.f32 %v2032_v36, %v1772_v40  ;;  %v1790_v6 = vadd.f32 %v3968_v21, %v5018_v44  ;;  %v2044_v51 = vpop.f32.mrf.mxu1 }
 0x17c   : > { %v1783_v45 = vpop.f32.mrf.mxu0 }
 0x17d   : > { %v5134_v35 = vadd.f32 %v4024_v11, %v1790_v6  ;;  %v1784_v19 = vadd.f32 %v1783_v45, %v5021_v3  ;;  %v5137_v24 = vpop.f32.mrf.mxu1 }
 0x17e   : > { %v3971_v37 = vpop.f32.mrf.mxu0 }
 0x17f   : > { %v5139_v31 = vadd.f32 %v2044_v51, %v1784_v19  ;;  %v5141_v4 = vpop.f32.mrf.mxu1 }
 0x180   : > { %v1795_v12 = vpop.f32.mrf.mxu0 }
 0x181   : > { %v4030_v17 = vpop.f32.mrf.mxu1 }
 0x182   : > { %v3974_v18 = vpop.f32.mrf.mxu0 }
 0x183   : > { %v5143_v53 = vpop.f32.mrf.mxu1 }
 0x184   : > { %v1807_v5 = vpop.f32.mrf.mxu0 }
 0x185   : > { %v4033_v44 = vpop.f32.mrf.mxu1 }
 0x186   : > { %v3977_v46 = vpop.f32.mrf.mxu0 }
 0x187   : > { %v2080_v16 = vpop.f32.mrf.mxu1 }
 0x188   : > { %v1819_v62 = vpop.f32.mrf.mxu0 }
 0x189   : > { %v4036_v47 = vpop.f32.mrf.mxu1 }
 0x18a   : > { %v3980_v39 = vpop.f32.mrf.mxu0 }
 0x18b   : > { %v1838_v3 = vadd.f32 %v3980_v39, %v5042_v52  ;;  %v2092_v36 = vpop.f32.mrf.mxu1 }
 0x18c   : > { %v1831_v10 = vpop.f32.mrf.mxu0 }
 0x18d   : > { %v5146_v40 = vadd.f32 %v4036_v47, %v1838_v3  ;;  %v1832_v11 = vadd.f32 %v1831_v10, %v5045_v13  ;;  %v4039_v21 = vpop.f32.mrf.mxu1 }
 0x18e   : > { %v3983_v6 = vpop.f32.mrf.mxu0 }
 0x18f   : > { %6001 = vst [vmem:[#allocation13_spill] sm:$0xff] %v5146_v40  ;;  %v5149_v51 = vadd.f32 %v2092_v36, %v1832_v11  ;;  %v1850_v45 = vadd.f32 %v3983_v6, %v5048_v8  ;;  %v2104_v19 = vpop.f32.mrf.mxu1  ;;  %v1826_v8 = vadd.f32 %v3977_v46, %v5036_v43  ;;  %v1802_v40 = vadd.f32 %v3971_v37, %v5024_v20 }
 0x190   : > { %v1843_v29 = vpop.f32.mrf.mxu0 }
 0x191   : > { %6002 = vst [vmem:[#allocation14_spill] sm:$0xff] %v5149_v51  ;;  %v5152_v42 = vadd.f32 %v4039_v21, %v1850_v45  ;;  %v1844_v1 = vadd.f32 %v1843_v29, %v5051_v57  ;;  %v5155_v23 = vpop.f32.mrf.mxu1  ;;  %v1820_v29 = vadd.f32 %v1819_v62, %v5039_v22  ;;  %v2087_v21 = vadd.f32 %v4033_v44, %v1826_v8 }
 0x192   : > { %v5157_v52 = vpop.f32.mrf.mxu0  ;;  %v1814_v45 = vadd.f32 %v3974_v18, %v5030_v26  ;;  %v1328_v22 = vadd.f32 %v5083_v60, %v4988_v15  ;;  %v1321_v44 = vadd.f32 %v5089_v38, %v4991_v55  ;;  %v1808_v26 = vadd.f32 %v1807_v5, %v5033_v59 }
 0x193   : > { %v5159_v47 = vadd.f32 %v2104_v19, %v1844_v1  ;;  %v5161_v39 = vpop.f32.mrf.mxu1  ;;  %v2081_v51 = vadd.f32 %v2080_v16, %v1820_v29  ;;  %v2201_v43 = vmax.f32 %v2087_v21, 0.0  ;;  %v2063_v37 = vadd.f32 %v5137_v24, %v1802_v40 }
 0x194   : > { %v5163_v13 = vpop.f32.mrf.mxu0  ;;  %v2075_v63 = vadd.f32 %v4030_v17, %v1814_v45  ;;  %v1796_v17 = vadd.f32 %v1795_v12, %v5027_v50  ;;  %v1653_v55 = vadd.f32 %v5081_v48, %v1328_v22  ;;  %v1645_v38 = vadd.f32 %v5087_v7, %v1321_v44 }
 0x195   : > { %6003 = vst [vmem:[#allocation15_spill] sm:$0xff] %v5159_v47  ;;  %v5165_v3 = vpop.f32.mrf.mxu1  ;;  %v2200_v18 = vmax.f32 %v2081_v51, 0.0  ;;  %v2278_v29 = vsel %vm271_vm0, %v2201_v43, 0  ;;  %v2197_v48 = vmax.f32 %v2063_v37, 0.0 }
 0x196   : > { %v5167_v36 = vpop.f32.mrf.mxu0  ;;  %v2199_v15 = vmax.f32 %v2075_v63, 0.0  ;;  %v2057_v7 = vadd.f32 %v5141_v4, %v1796_v17 }
 0x197   : > { %v5170_v10 = vpop.f32.mrf.mxu1  ;;  %v5212_v37 = vsel %vm271_vm0, %v2197_v48, 0 }
 0x198   : > { %v5172_v11 = vpop.f32.mrf.mxu0  ;;  %v2272_v43 = vsel %vm271_vm0, %v2199_v15, 0  ;;  %v2196_v17 = vmax.f32 %v2057_v7, 0.0 }
 0x199   : > { %v5174_v57 = vpop.f32.mrf.mxu1 }
 0x19a   : > { %v3992_v1 = vpop.f32.mrf.mxu0 }
 0x19b   : > { %v5177_v6 = vpop.f32.mrf.mxu1 }
 0x19c   : > { %v5180_v19 = vpop.f32.mrf.mxu0 }
 0x19d   : > { %v4051_v28 = vpop.f32.mrf.mxu1 }
 0x19e   : > { %v3995_v41 = vpop.f32.mrf.mxu0 }
 0x19f   : > { %v2152_v46 = vpop.f32.mrf.mxu1  ;;  %v1898_v8 = vadd.f32 %v3995_v41, %v5072_v30  ;;  %v2069_v30 = vadd.f32 %v5143_v53, %v1808_v26  ;;  %v5197_v41 = vand.u32 4294901760, %v2278_v29 }
 0x1a0   : > { %v1891_v47 = vpop.f32.mrf.mxu0 }
 0x1a1   : > { %v4054_v62 = vpop.f32.mrf.mxu1  ;;  %v2159_v51 = vadd.f32 %v4051_v28, %v1898_v8  ;;  %v1892_v50 = vadd.f32 %v1891_v47, %v5075_v14  ;;  %v2198_v26 = vmax.f32 %v2069_v30, 0.0  ;;  %v5205_v28 = vsub.f32 %v2278_v29, %v5197_v41 }
 0x1a2   : > { %v3998_v16 = vpop.f32.mrf.mxu0  ;;  %v1886_v14 = vadd.f32 %v3992_v1, %v5066_v32 }
 0x1a3   : > { %v1910_v21 = vadd.f32 %v3998_v16, %v5078_v54  ;;  %v2164_v20 = vpop.f32.mrf.mxu1  ;;  %v2275_v54 = vsel %vm271_vm0, %v2200_v18, 0  ;;  %v2213_v8 = vmax.f32 %v2159_v51, 0.0  ;;  %v2153_v16 = vadd.f32 %v2152_v46, %v1892_v50 }
 0x1a4   : > { %v1903_v60 = vpop.f32.mrf.mxu0  ;;  %v5207_v18 = vand.u32 4294901760, %v2275_v54  ;;  %v2269_v1 = vsel %vm271_vm0, %v2198_v26, 0  ;;  %v5874_v46 = vand.u32 4294901760, %v5205_v28 }
 0x1a5   : > { %v2171_v59 = vadd.f32 %v4054_v62, %v1910_v21  ;;  %v1904_v5 = vadd.f32 %v1903_v60, %v5085_v61  ;;  %v4057_v24 = vpop.f32.mrf.mxu1  ;;  %v5216_v60 = vand.u32 4294901760, %v2272_v43  ;;  %v2212_v30 = vmax.f32 %v2153_v16, 0.0 }
 0x1a6   : > { %v4001_v45 = vpop.f32.mrf.mxu0 }
 0x1a7   : > { %v2215_v63 = vmax.f32 %v2171_v59, 0.0  ;;  %v2165_v12 = vadd.f32 %v2164_v20, %v1904_v5  ;;  %v1922_v40 = vadd.f32 %v4001_v45, %v1653_v55  ;;  %v2176_v47 = vpop.f32.mrf.mxu1  ;;  %v2195_v20 = vmax.f32 %v5134_v35, 0.0 }
 0x1a8   : > { %v1915_v61 = vpop.f32.mrf.mxu0  ;;  %v2147_v59 = vadd.f32 %v5174_v57, %v1886_v14  ;;  %v2314_v5 = vsel %vm271_vm0, %v2213_v8, 0  ;;  %v5245_v57 = vsub.f32 %v2272_v43, %v5216_v60  ;;  %v2440_v43 = vsub.f32 %v5205_v28, %v5874_v46 }
 0x1a9   : > { %v2320_v53 = vsel %vm271_vm0, %v2215_v63, 0  ;;  %v2214_v22 = vmax.f32 %v2165_v12, 0.0  ;;  %v2183_v44 = vadd.f32 %v4057_v24, %v1922_v40  ;;  %v1916_v62 = vadd.f32 %v1915_v61, %v1645_v38 }
 0x1aa   : > { %v5214_v15 = vand.u32 4294901760, %v2320_v53  ;;  %v5223_v38 = vsub.f32 %v2275_v54, %v5207_v18  ;;  %v5242_v54 = vand.u32 4294901760, %v5212_v37  ;;  %v5247_v12 = vand.u32 4294901760, %v2269_v1 }
 0x1ab   : > { %v2217_v4 = vmax.f32 %v2183_v44, 0.0  ;;  %v2177_v21 = vadd.f32 %v2176_v47, %v1916_v62  ;;  %v2317_v29 = vsel %vm271_vm0, %v2214_v22, 0  ;;  %v1880_v40 = vadd.f32 %v5180_v19, %v5069_v58 }
 0x1ac   : > { %v5231_v45 = vsub.f32 %v2320_v53, %v5214_v15  ;;  %v5233_v24 = vand.u32 4294901760, %v2317_v29  ;;  %v5872_v48 = vand.u32 4294901760, %v5223_v38  ;;  %v1874_v53 = vadd.f32 %v5167_v36, %v5060_v0 }
 0x1ad   : > { %v2326_v55 = vsel %vm271_vm0, %v2217_v4, 0  ;;  %v2216_v32 = vmax.f32 %v2177_v21, 0.0  ;;  %v2211_v22 = vmax.f32 %v2147_v59, 0.0  ;;  %v5263_v58 = vand.u32 4294901760, %v2314_v5 }
 0x1ae   : > { %v5225_v35 = vand.u32 4294901760, %v2326_v55  ;;  %v2311_v19 = vsel %vm271_vm0, %v2212_v30, 0  ;;  %v5267_v44 = vsub.f32 %v2317_v29, %v5233_v24  ;;  %v5869_v14 = vand.u32 4294901760, %v5231_v45 }
 0x1af   : > { %v2323_v51 = vsel %vm271_vm0, %v2216_v32, 0  ;;  %v2263_v47 = vsel %vm271_vm0, %v2196_v17, 0  ;;  %v5861_v0 = vand.u32 4294901760, %v5245_v57  ;;  %v5277_v36 = vsub.f32 %v2269_v1, %v5247_v12 }
 0x1b0   : > { %v5236_v50 = vsub.f32 %v2326_v55, %v5225_v35  ;;  %v5238_v63 = vand.u32 4294901760, %v2323_v51  ;;  %3518 = vmatprep.subr.mxu0 %v5225_v35  ;;  %v2141_v8 = vadd.f32 %v5177_v6, %v1880_v40  ;;  %v2441_v4 = vand.u32 4294901760, %v2440_v43 }
 0x1b1   : > { %3519 = vmatpush3.xpose.msra.mxu0 %v5197_v41  ;;  %v2447_v17 = vsub.f32 %v5223_v38, %v5872_v48  ;;  %v2135_v29 = vadd.f32 %v5165_v3, %v1874_v53  ;;  %v2308_v55 = vsel %vm271_vm0, %v2211_v22, 0  ;;  %v5291_v6 = vsub.f32 %v2314_v5, %v5263_v58  ;;  %v2219_v5 = vld [vmem:[#allocation2] sm:$0x1] }
 0x1b2   : > { %v5254_v7 = vsub.f32 %v2323_v51, %v5238_v63  ;;  %3520 = vmatprep.subr.mxu0 %v5238_v63  ;;  %v5876_v61 = vand.u32 4294901760, %v5236_v50  ;;  %v5293_v32 = vand.u32 4294901760, %v2311_v19  ;;  %v2566_v59 = vsub.f32 %v5231_v45, %v5869_v14 }
 0x1b3   : > { %v5868_v30 = vand.u32 4294901760, %v5267_v44  ;;  %v2260_v51 = vsel %vm271_vm0, %v2195_v20, 0  ;;  %v2194_v40 = vmax.f32 %v5139_v31, 0.0  ;;  %v1868_v3 = vadd.f32 %v5172_v11, %v5063_v56 }
 0x1b4   : > { %v2552_v62 = vsub.f32 %v5236_v50, %v5876_v61  ;;  %v5873_v26 = vand.u32 4294901760, %v5254_v7  ;;  %v2210_v43 = vmax.f32 %v2141_v8, 0.0  ;;  %v5306_v53 = vsub.f32 %v5212_v37, %v5242_v54 }
 0x1b5   : > { %3521 = vmatpush3.xpose.msra.mxu0 %v5207_v18  ;;  %v5308_v22 = vand.u32 4294901760, %v2263_v47  ;;  %v2454_v56 = vsub.f32 %v5245_v57, %v5861_v0  ;;  %v1862_v31 = vadd.f32 %v5157_v52, %v5054_v27  ;;  %v2209_v11 = vmax.f32 %v2135_v29, 0.0 }
 0x1b6   : > { %3522 = vmatprep.subr.mxu0 %v5214_v15  ;;  %v2553_v16 = vand.u32 4294901760, %v2552_v62  ;;  %v2559_v21 = vsub.f32 %v5254_v7, %v5873_v26  ;;  %v5864_v62 = vand.u32 4294901760, %v5277_v36  ;;  %v5317_v20 = vand.u32 4294901760, %v2308_v55 }
 0x1b7   : > { %v2448_v8 = vand.u32 4294901760, %v2447_v17  ;;  %v4166_v37 = vmov 0   ;;  %v2193_v0 = vmax.f32 %v5127_v2, 0.0  ;;  %v5327_v27 = vand.u32 4294901760, %v2260_v51 }
 0x1b8   : > { %3552 = vmatprep.subr.mxu1 %v2553_v16  ;;  %v2560_v1 = vand.u32 4294901760, %v2559_v21  ;;  %4099 = vset.pattern.permute.xlu0 %v4166_v37  ;;  %v5320_v16 = vsub.f32 %v2311_v19, %v5293_v32  ;;  %v2573_v21 = vsub.f32 %v5267_v44, %v5868_v30  ;;  %v2129_v52 = vadd.f32 %v5170_v10, %v1868_v3 }
 0x1b9   : > { %3523 = vmatpush3.xpose.msra.mxu0 %v5216_v60  ;;  %3553 = vmatpush3.xpose.msra.mxu1 %v2441_v4  ;;  %v2567_v4 = vand.u32 4294901760, %v2566_v59  ;;  %v2305_v17 = vsel %vm271_vm0, %v2210_v43, 0  ;;  %v2257_v19 = vsel %vm271_vm0, %v2194_v40, 0  ;;  %v5863_v29 = vand.u32 4294901760, %v5306_v53 }
 0x1ba   : > { %3524 = vmatprep.subr.mxu0 %v5233_v24  ;;  %3554 = vmatprep.subr.mxu1 %v2560_v1  ;;  %v5862_v1 = vand.u32 4294901760, %v5291_v6  ;;  %v5335_v59 = vsub.f32 %v2263_v47, %v5308_v22  ;;  %v2455_v2 = vand.u32 4294901760, %v2454_v56  ;;  %v2302_v10 = vsel %vm271_vm0, %v2209_v11, 0 }
 0x1bb   : > { %2222 = vperm.xlu0 %4099, %v2219_v5   ;;  %v2123_v5 = vadd.f32 %v5155_v23, %v1862_v31  ;;  %v5341_v3 = vsub.f32 %v2308_v55, %v5317_v20  ;;  %v2461_v40 = vsub.f32 %v5277_v36, %v5864_v62  ;;  %v5346_v43 = vand.u32 4294901760, %v2305_v17 }
 0x1bc   : > { %v2580_v47 = vsub.f32 %v5291_v6, %v5862_v1  ;;  %v5865_v56 = vand.u32 4294901760, %v5320_v16  ;;  %v2254_v23 = vsel %vm271_vm0, %v2193_v0, 0  ;;  %v1856_v31 = vadd.f32 %v5163_v13, %v5057_v33 }
 0x1bd   : > { %3525 = vmatpush3.xpose.msra.mxu0 %v5247_v12  ;;  %3555 = vmatpush3.xpose.msra.mxu1 %v2448_v8  ;;  %v2574_v8 = vand.u32 4294901760, %v2573_v21  ;;  %v2208_v55 = vmax.f32 %v2129_v52, 0.0  ;;  %v2192_v11 = vmax.f32 %v5131_v25, 0.0  ;;  %v5358_v37 = vsub.f32 %v2260_v51, %v5327_v27 }
 0x1be   : > { %3526 = vmatprep.subr.mxu0 %v5263_v58  ;;  %3556 = vmatprep.subr.mxu1 %v2567_v4  ;;  %v5360_v4 = vand.u32 4294901760, %v2257_v19  ;;  %v5866_v21 = vand.u32 4294901760, %v5335_v59  ;;  %v2207_v0 = vmax.f32 %v2123_v5, 0.0  ;;  %v5364_v1 = vand.u32 4294901760, %v2302_v10 }
 0x1bf   : > { %v2462_v33 = vand.u32 4294901760, %v2461_v40  ;;  %v2468_v13 = vsub.f32 %v5306_v53, %v5863_v29  ;;  %v5370_v25 = vsub.f32 %v2305_v17, %v5346_v43  ;;  %v2581_v51 = vand.u32 4294901760, %v2580_v47 }
 0x1c0   : > { %6004 = vst [vmem:[#allocation16_spill] sm:$0xff] %v5360_v4  ;;  %6005 = vst [vmem:[#allocation17_spill] sm:$0xff] %v5364_v1  ;;  %v2587_v52 = vsub.f32 %v5320_v16, %v5865_v56  ;;  %v2117_v5 = vadd.f32 %v5161_v39, %v1856_v31  ;;  %v2299_v40 = vsel %vm271_vm0, %v2208_v55, 0  ;;  %v5380_v29 = vand.u32 4294901760, %v2254_v23 }
 0x1c1   : > { %3527 = vmatpush3.xpose.msra.mxu0 %v5242_v54  ;;  %3557 = vmatpush3.xpose.msra.mxu1 %v2455_v2  ;;  %v5867_v2 = vand.u32 4294901760, %v5341_v3  ;;  %v2251_v17 = vsel %vm271_vm0, %v2192_v11, 0  ;;  %v5870_v47 = vand.u32 4294901760, %v5358_v37  ;;  %v5385_v62 = vsub.f32 %v2257_v19, %v5360_v4 }
 0x1c2   : > { %3528 = vmatprep.subr.mxu0 %v5293_v32  ;;  %3558 = vmatprep.subr.mxu1 %v2574_v8  ;;  %v2191_v8 = vmax.f32 %v5117_v34, 0.0  ;;  %6006 = vst [vmem:[#allocation18_spill] sm:$0xff] %v5380_v29  ;;  %v2296_v34 = vsel %vm271_vm0, %v2207_v0, 0  ;;  %v5390_v39 = vsub.f32 %v2302_v10, %v5364_v1  ;;  %v2469_v31 = vand.u32 4294901760, %v2468_v13 }
 0x1c3   : > { %v2475_v55 = vsub.f32 %v5335_v59, %v5866_v21  ;;  %v2588_v11 = vand.u32 4294901760, %v2587_v52  ;;  %v2594_v19 = vsub.f32 %v5341_v3, %v5867_v2  ;;  %v5871_v56 = vand.u32 4294901760, %v5370_v25 }
 0x1c4   : > { %v2206_v0 = vmax.f32 %v2117_v5, 0.0  ;;  %v2190_v10 = vmax.f32 %v5122_v49, 0.0  ;;  %v5405_v13 = vsub.f32 %v2254_v23, %v5380_v29  ;;  %v5407_v21 = vand.u32 4294901760, %v2251_v17 }
 0x1c5   : > { %3529 = vmatpush3.xpose.msra.mxu0 %v5308_v22  ;;  %3559 = vmatpush3.xpose.msra.mxu1 %v2462_v33  ;;  %v5395_v33 = vand.u32 4294901760, %v2299_v40  ;;  %v5875_v52 = vand.u32 4294901760, %v5385_v62  ;;  %v2205_v2 = vmax.f32 %v5152_v42, 0.0  ;;  %v5412_v30 = vand.u32 4294901760, %v2296_v34 }
 0x1c6   : > { %3530 = vmatprep.subr.mxu0 %v5317_v20  ;;  %3560 = vmatprep.subr.mxu1 %v2581_v51  ;;  %v2248_v51 = vsel %vm271_vm0, %v2191_v8, 0  ;;  %6008 = vst [vmem:[#allocation20_spill] sm:$0xff] %v5407_v21  ;;  %v2476_v8 = vand.u32 4294901760, %v2475_v55  ;;  %v2482_v5 = vsub.f32 %v5358_v37, %v5870_v47  ;;  %v2595_v23 = vand.u32 4294901760, %v2594_v19 }
 0x1c7   : > { %6007 = vst [vmem:[#allocation19_spill] sm:$0xff] %v5395_v33  ;;  %6009 = vst [vmem:[#allocation21_spill] sm:$0xff] %v5412_v30  ;;  %v5418_v49 = vsub.f32 %v2299_v40, %v5395_v33  ;;  %v5877_v14 = vand.u32 4294901760, %v5390_v39  ;;  %v2293_v42 = vsel %vm271_vm0, %v2206_v0, 0  ;;  %v5427_v55 = vand.u32 4294901760, %v2248_v51 }
 0x1c8   : > { %v2245_v47 = vsel %vm271_vm0, %v2190_v10, 0  ;;  %v5884_v40 = vand.u32 4294901760, %v5405_v13  ;;  %v5432_v19 = vsub.f32 %v2251_v17, %v5407_v21  ;;  %v2483_v0 = vand.u32 4294901760, %v2482_v5 }
 0x1c9   : > { %3531 = vmatpush3.xpose.msra.mxu0 %v5327_v27  ;;  %3561 = vmatpush3.xpose.msra.mxu1 %v2469_v31  ;;  %v2601_v31 = vsub.f32 %v5370_v25, %v5871_v56  ;;  %6010 = vst [vmem:[#allocation22_spill] sm:$0xff] %v5427_v55  ;;  %v2290_v56 = vsel %vm271_vm0, %v2205_v2, 0  ;;  %v5442_v48 = vand.u32 4294901760, %v2293_v42  ;;  %v2608_v17 = vsub.f32 %v5390_v39, %v5877_v14  ;;  %v6013_v2 = vld [vmem:[#allocation15_spill] sm:$0xff]  ;;  %v6016_v14 = vld [vmem:[#allocation13_spill] sm:$0xff] }
 0x1ca   : > { %3532 = vmatprep.subr.mxu0 %v5346_v43  ;;  %3562 = vmatprep.subr.mxu1 %v2588_v11  ;;  %v2189_v11 = vmax.f32 %v5104_v9, 0.0  ;;  %6011 = vst [vmem:[#allocation23_spill] sm:$0xff] %v5432_v19  ;;  %v5437_v9 = vsub.f32 %v2296_v34, %v5412_v30  ;;  %v2204_v46 = vmax.f32 %v6013_v2, 0.0  ;;  %v6014_v34 = vld [vmem:[#allocation10_spill] sm:$0xff]  ;;  %v5455_v61 = vand.u32 4294901760, %v2245_v47 }
 0x1cb   : > { %6012 = vst [vmem:[#allocation24_spill] sm:$0xff] %v5442_v48  ;;  %v2602_v10 = vand.u32 4294901760, %v2601_v31  ;;  %v2188_v5 = vmax.f32 %v6014_v34, 0.0  ;;  %v2203_v26 = vmax.f32 %v6016_v14, 0.0  ;;  %v5466_v34 = vsub.f32 %v2293_v42, %v5442_v48 }
 0x1cc   : > { %6015 = vst [vmem:[#allocation25_spill] sm:$0xff] %v5455_v61  ;;  %v2287_v14 = vsel %vm271_vm0, %v2204_v46, 0  ;;  %v6024_v42 = vand.u32 4294901760, %v5437_v9 }
 0x1cd   : > { %3533 = vmatpush3.xpose.msra.mxu0 %v5360_v4  ;;  %3563 = vmatpush3.xpose.msra.mxu1 %v2476_v8  ;;  %v2489_v8 = vsub.f32 %v5385_v62, %v5875_v52  ;;  %v5453_v52 = vsub.f32 %v2248_v51, %v5427_v55  ;;  %6017 = vst [vmem:[#allocation15_spill] sm:$0xff] %v5466_v34  ;;  %v2609_v51 = vand.u32 4294901760, %v2608_v17 }
 0x1ce   : > { %3534 = vmatprep.subr.mxu0 %v5364_v1  ;;  %3564 = vmatprep.subr.mxu1 %v2595_v23  ;;  %v2242_v23 = vsel %vm271_vm0, %v2189_v11, 0  ;;  %v5460_v11 = vand.u32 4294901760, %v2290_v56  ;;  %v5480_v17 = vsub.f32 %v2245_v47, %v5455_v61  ;;  %v2622_v47 = vsub.f32 %v5437_v9, %v6024_v42 }
 0x1cf   : > { %v2490_v2 = vand.u32 4294901760, %v2489_v8  ;;  %v5475_v8 = vand.u32 4294901760, %v2242_v23 }
 0x1d1   : > { %3535 = vmatpush3.xpose.msra.mxu0 %v5380_v29  ;;  %3565 = vmatpush3.xpose.msra.mxu1 %v2483_v0  ;;  %v2496_v0 = vsub.f32 %v5405_v13, %v5884_v40  ;;  %v6018_v29 = vand.u32 4294901760, %v5418_v49  ;;  %6020 = vst [vmem:[#allocation10_spill] sm:$0xff] %v5475_v8  ;;  %v2239_v40 = vsel %vm271_vm0, %v2188_v5, 0 }
 0x1d2   : > { %3536 = vmatprep.subr.mxu0 %v5395_v33  ;;  %3566 = vmatprep.subr.mxu1 %v2602_v10  ;;  %v6019_v10 = vld [vmem:[#allocation6_spill] sm:$0xff] }
 0x1d3   : > { %v2615_v31 = vsub.f32 %v5418_v49, %v6018_v29  ;;  %v2187_v1 = vmax.f32 %v6019_v10, 0.0  ;;  %v2284_v29 = vsel %vm271_vm0, %v2203_v26, 0  ;;  %v5485_v10 = vsub.f32 %v2290_v56, %v5460_v11  ;;  %v6026_v56 = vld [vmem:[#allocation7_spill] sm:$0xff] }
 0x1d4   : > { %v2497_v46 = vand.u32 4294901760, %v2496_v0  ;;  %v2186_v0 = vmax.f32 %v6026_v56, 0.0  ;;  %v5507_v42 = vand.u32 4294901760, %v2284_v29  ;;  %v2623_v56 = vand.u32 4294901760, %v2622_v47 }
 0x1d5   : > { %3537 = vmatpush3.xpose.msra.mxu0 %v5407_v21  ;;  %3567 = vmatpush3.xpose.msra.mxu1 %v2490_v2  ;;  %6021 = vst [vmem:[#allocation13_spill] sm:$0xff] %v5485_v10  ;;  %v6022_v2 = vand.u32 4294901760, %v5432_v19  ;;  %v5490_v21 = vand.u32 4294901760, %v2287_v14  ;;  %v2616_v5 = vand.u32 4294901760, %v2615_v31  ;;  %v2236_v26 = vsel %vm271_vm0, %v2187_v1, 0 }
 0x1d6   : > { %3538 = vmatprep.subr.mxu0 %v5412_v30  ;;  %3568 = vmatprep.subr.mxu1 %v2609_v51  ;;  %v6025_v51 = vld [vmem:[#allocation14_spill] sm:$0xff]  ;;  %6028 = vst [vmem:[#allocation7_spill] sm:$0xff] %v5507_v42  ;;  %v6029_v30 = vand.u32 4294901760, %v5453_v52  ;;  %v2233_v31 = vsel %vm271_vm0, %v2186_v0, 0  ;;  %v5530_v47 = vsub.f32 %v2284_v29, %v5507_v42  ;;  %v6032_v0 = vand.u32 4294901760, %v5485_v10 }
 0x1d7   : > { %v2503_v33 = vsub.f32 %v5432_v19, %v6022_v2  ;;  %6023 = vst [vmem:[#allocation6_spill] sm:$0xff] %v5490_v21  ;;  %v2202_v4 = vmax.f32 %v6025_v51, 0.0  ;;  %v5501_v2 = vsub.f32 %v2242_v23, %v5475_v8  ;;  %v5503_v19 = vand.u32 4294901760, %v2239_v40 }
 0x1d8   : > { %v5513_v1 = vsub.f32 %v2287_v14, %v5490_v21  ;;  %v6030_v23 = vand.u32 4294901760, %v5466_v34  ;;  %v5546_v29 = vand.u32 4294901760, %v2233_v31 }
 0x1d9   : > { %3539 = vmatpush3.xpose.msra.mxu0 %v5427_v55  ;;  %3569 = vmatpush3.xpose.msra.mxu1 %v2497_v46  ;;  %6027 = vst [vmem:[#allocation14_spill] sm:$0xff] %v5501_v2  ;;  %v2504_v51 = vand.u32 4294901760, %v2503_v33  ;;  %v2510_v46 = vsub.f32 %v5453_v52, %v6029_v30  ;;  %v5521_v33 = vand.u32 4294901760, %v2236_v26  ;;  %v5527_v14 = vsub.f32 %v2239_v40, %v5503_v19 }
 0x1da   : > { %3540 = vmatprep.subr.mxu0 %v5442_v48  ;;  %3570 = vmatprep.subr.mxu1 %v2616_v5  ;;  %v2629_v55 = vsub.f32 %v5466_v34, %v6030_v23  ;;  %v2281_v5 = vsel %vm271_vm0, %v2202_v4, 0  ;;  %v6031_v4 = vand.u32 4294901760, %v5480_v17  ;;  %v2636_v30 = vsub.f32 %v5485_v10, %v6032_v0 }
 0x1db   : > { %v2511_v23 = vand.u32 4294901760, %v2510_v46  ;;  %v5535_v48 = vand.u32 4294901760, %v2281_v5  ;;  %v5543_v40 = vsub.f32 %v2236_v26, %v5521_v33  ;;  %v5904_v46 = vand.u32 4294901760, %v5527_v14 }
 0x1dd   : > { %3541 = vmatpush3.xpose.msra.mxu0 %v5455_v61  ;;  %3571 = vmatpush3.xpose.msra.mxu1 %v2504_v51  ;;  %v2517_v51 = vsub.f32 %v5480_v17, %v6031_v4  ;;  %v2630_v61 = vand.u32 4294901760, %v2629_v55  ;;  %6033 = vst [vmem:[#allocation26_spill] sm:$0xff] %v5543_v40  ;;  %v6034_v4 = vand.u32 4294901760, %v5501_v2 }
 0x1de   : > { %3542 = vmatprep.subr.mxu0 %v5460_v11  ;;  %3572 = vmatprep.subr.mxu1 %v2623_v56  ;;  %v5553_v56 = vsub.f32 %v2281_v5, %v5535_v48 }
 0x1df   : > { %v2518_v55 = vand.u32 4294901760, %v2517_v51  ;;  %v2524_v0 = vsub.f32 %v5501_v2, %v6034_v4  ;;  %v5563_v51 = vsub.f32 %v2233_v31, %v5546_v29 }
 0x1e1   : > { %3543 = vmatpush3.xpose.msra.mxu0 %v5475_v8  ;;  %3573 = vmatpush3.xpose.msra.mxu1 %v2511_v23  ;;  %v2637_v8 = vand.u32 4294901760, %v2636_v30  ;;  %v6035_v23 = vand.u32 4294901760, %v5513_v1  ;;  %v2525_v5 = vand.u32 4294901760, %v2524_v0  ;;  %v2531_v30 = vsub.f32 %v5527_v14, %v5904_v46 }
 0x1e2   : > { %3544 = vmatprep.subr.mxu0 %v5490_v21  ;;  %3574 = vmatprep.subr.mxu1 %v2630_v61  ;;  %v5903_v21 = vand.u32 4294901760, %v5530_v47  ;;  %v5907_v61 = vand.u32 4294901760, %v5543_v40 }
 0x1e3   : > { %v2643_v26 = vsub.f32 %v5513_v1, %v6035_v23  ;;  %v2532_v31 = vand.u32 4294901760, %v2531_v30 }
 0x1e4   : > { %v2650_v23 = vsub.f32 %v5530_v47, %v5903_v21  ;;  %v2538_v0 = vsub.f32 %v5543_v40, %v5907_v61  ;;  %v6048_v61 = vld [vmem:[#allocation24_spill] sm:$0xff] }
 0x1e5   : > { %3545 = vmatpush3.xpose.msra.mxu0 %v5503_v19  ;;  %3575 = vmatpush3.xpose.msra.mxu1 %v2518_v55  ;;  %v2644_v4 = vand.u32 4294901760, %v2643_v26  ;;  %v5905_v55 = vand.u32 4294901760, %v5553_v56 }
 0x1e6   : > { %3546 = vmatprep.subr.mxu0 %v5507_v42  ;;  %3576 = vmatprep.subr.mxu1 %v2637_v8  ;;  %v5906_v8 = vand.u32 4294901760, %v5563_v51  ;;  %v2651_v26 = vand.u32 4294901760, %v2650_v23 }
 0x1e7   : > { %v2657_v21 = vsub.f32 %v5553_v56, %v5905_v55  ;;  %v6037_v55 = vld [vmem:[#allocation9_spill] sm:$0xff] }
 0x1e8   : > { %v2545_v30 = vsub.f32 %v5563_v51, %v5906_v8  ;;  %v6047_v8 = vld [vmem:[#allocation22_spill] sm:$0xff] }
 0x1e9   : > { %3547 = vmatpush3.xpose.msra.mxu0 %v5521_v33  ;;  %3577 = vmatpush3.xpose.msra.mxu1 %v2525_v5  ;;  %v2539_v5 = vand.u32 4294901760, %v2538_v0  ;;  %v2658_v46 = vand.u32 4294901760, %v2657_v21  ;;  %v6039_v21 = vld [vmem:[#allocation11_spill] sm:$0xff]  ;;  %v6041_v0 = vld [vmem:[#allocation16_spill] sm:$0xff] }
 0x1ea   : > { %3548 = vmatprep.subr.mxu0 %v5535_v48  ;;  %3578 = vmatprep.subr.mxu1 %v2644_v4  ;;  %v6036_v4 = vld [vmem:[#allocation12_spill] sm:$0xff]  ;;  %v2546_v23 = vand.u32 4294901760, %v2545_v30  ;;  %v6044_v30 = vld [vmem:[#allocation19_spill] sm:$0xff] }
 0x1ed   : > { %3549 = vmatpush3.xpose.msra.mxu0 %v5546_v29  ;;  %3579 = vmatpush3.xpose.msra.mxu1 %v2532_v31  ;;  %v6038_v31 = vld [vmem:[#allocation8_spill] sm:$0xff] }
 0x1ee   : > { %3580 = vmatprep.subr.mxu1 %v2651_v26  ;;  %3586 = vmatprep.subr.mxu0 %v5236_v50  ;;  %v6042_v26 = vld [vmem:[#allocation17_spill] sm:$0xff] }
 0x1f0   : > { %3551 = vmatmul.mubr.f32.vlgmr.msra.gmra.mxu0 %v6036_v4  ;;  %v6045_v4 = vld [vmem:[#allocation20_spill] sm:$0xff] }
 0x1f1   : > { %3581 = vmatpush3.xpose.msra.mxu1 %v2539_v5  ;;  %3587 = vmatpush3.xpose.msra.mxu0 %v5205_v28  ;;  %v6043_v5 = vld [vmem:[#allocation18_spill] sm:$0xff] }
 0x1f2   : > { %3582 = vmatprep.subr.mxu1 %v2658_v46  ;;  %3588 = vmatprep.subr.mxu0 %v5254_v7  ;;  %v6040_v46 = vld [vmem:[#allocation23_spill] sm:$0xff] }
 0x1f3   : > { %3618 = vmatprep.mubr.f32.mxu0 %v6037_v55 }
 0x1f5   : > { %3583 = vmatpush3.xpose.msra.mxu1 %v2546_v23  ;;  %3589 = vmatpush3.xpose.msra.mxu0 %v5223_v38  ;;  %v6046_v23 = vld [vmem:[#allocation21_spill] sm:$0xff] }
 0x1f6   : > { %3590 = vmatprep.subr.mxu0 %v5231_v45  ;;  %3620 = vmatprep.subr.mxu1 %v5225_v35 }
 0x1f8   : > { %3585 = vmatmul.mubr.f32.vlgmr.msra.gmra.mxu1 %v6038_v31 }
 0x1f9   : > { %3591 = vmatpush3.xpose.msra.mxu0 %v5245_v57  ;;  %3621 = vmatpush3.xpose.msra.mxu1 %v5197_v41 }
 0x1fa   : > { %3592 = vmatprep.subr.mxu0 %v5267_v44  ;;  %3622 = vmatprep.subr.mxu1 %v5238_v63 }
 0x1fb   : > { %3652 = vmatprep.mubr.f32.mxu1 %v6039_v21 }
 0x1fd   : > { %3593 = vmatpush3.xpose.msra.mxu0 %v5277_v36  ;;  %3623 = vmatpush3.xpose.msra.mxu1 %v5207_v18 }
 0x1fe   : > { %3594 = vmatprep.subr.mxu0 %v5291_v6  ;;  %3624 = vmatprep.subr.mxu1 %v5214_v15 }
 0x201   : > { %3595 = vmatpush3.xpose.msra.mxu0 %v5306_v53  ;;  %3625 = vmatpush3.xpose.msra.mxu1 %v5216_v60 }
 0x202   : > { %3596 = vmatprep.subr.mxu0 %v5320_v16  ;;  %3626 = vmatprep.subr.mxu1 %v5233_v24 }
 0x205   : > { %3597 = vmatpush3.xpose.msra.mxu0 %v5335_v59  ;;  %3627 = vmatpush3.xpose.msra.mxu1 %v5247_v12 }
 0x206   : > { %3598 = vmatprep.subr.mxu0 %v5341_v3  ;;  %3628 = vmatprep.subr.mxu1 %v5263_v58 }
 0x209   : > { %3599 = vmatpush3.xpose.msra.mxu0 %v5358_v37  ;;  %3629 = vmatpush3.xpose.msra.mxu1 %v5242_v54 }
 0x20a   : > { %3600 = vmatprep.subr.mxu0 %v5370_v25  ;;  %3630 = vmatprep.subr.mxu1 %v5293_v32 }
 0x20d   : > { %3601 = vmatpush3.xpose.msra.mxu0 %v5385_v62  ;;  %3631 = vmatpush3.xpose.msra.mxu1 %v5308_v22 }
 0x20e   : > { %3602 = vmatprep.subr.mxu0 %v5390_v39  ;;  %3632 = vmatprep.subr.mxu1 %v5317_v20 }
 0x211   : > { %3603 = vmatpush3.xpose.msra.mxu0 %v5405_v13  ;;  %3633 = vmatpush3.xpose.msra.mxu1 %v5327_v27 }
 0x212   : > { %3604 = vmatprep.subr.mxu0 %v5418_v49  ;;  %3634 = vmatprep.subr.mxu1 %v5346_v43 }
 0x215   : > { %3605 = vmatpush3.xpose.msra.mxu0 %v6040_v46  ;;  %3635 = vmatpush3.xpose.msra.mxu1 %v6041_v0 }
 0x216   : > { %3606 = vmatprep.subr.mxu0 %v5437_v9  ;;  %3636 = vmatprep.subr.mxu1 %v6042_v26 }
 0x219   : > { %3607 = vmatpush3.xpose.msra.mxu0 %v5453_v52  ;;  %3637 = vmatpush3.xpose.msra.mxu1 %v6043_v5 }
 0x21a   : > { %3608 = vmatprep.subr.mxu0 %v5466_v34  ;;  %3638 = vmatprep.subr.mxu1 %v6044_v30  ;;  %v6049_v34 = vld [vmem:[#allocation25_spill] sm:$0xff] }
 0x21d   : > { %3609 = vmatpush3.xpose.msra.mxu0 %v5480_v17  ;;  %3639 = vmatpush3.xpose.msra.mxu1 %v6045_v4 }
 0x21e   : > { %3610 = vmatprep.subr.mxu0 %v5485_v10  ;;  %3640 = vmatprep.subr.mxu1 %v6046_v23  ;;  %v6050_v10 = vld [vmem:[#allocation10_spill] sm:$0xff] }
 0x221   : > { %3611 = vmatpush3.xpose.msra.mxu0 %v5501_v2  ;;  %3641 = vmatpush3.xpose.msra.mxu1 %v6047_v8  ;;  %v6051_v2 = vld [vmem:[#allocation6_spill] sm:$0xff] }
 0x222   : > { %3612 = vmatprep.subr.mxu0 %v5513_v1  ;;  %3642 = vmatprep.subr.mxu1 %v6048_v61 }
 0x225   : > { %3613 = vmatpush3.xpose.msra.mxu0 %v5527_v14  ;;  %3643 = vmatpush3.xpose.msra.mxu1 %v6049_v34  ;;  %v6052_v34 = vand.u32 4294901760, %v5236_v50  ;;  %v6056_v50 = vand.u32 4294901760, %v5231_v45  ;;  %v6061_v45 = vand.u32 4294901760, %v5306_v53  ;;  %v6076_v53 = vand.u32 4294901760, %v5480_v17 }
 0x226   : > { %3614 = vmatprep.subr.mxu0 %v5530_v47  ;;  %3644 = vmatprep.subr.mxu1 %v5460_v11 }
 0x229   : > { %3615 = vmatpush3.xpose.msra.mxu0 %v5543_v40  ;;  %3645 = vmatpush3.xpose.msra.mxu1 %v6050_v10  ;;  %v6053_v40 = vand.u32 4294901760, %v5205_v28  ;;  %v6057_v28 = vand.u32 4294901760, %v5245_v57  ;;  %v6068_v57 = vand.u32 4294901760, %v5390_v39  ;;  %v6087_v39 = vand.u32 4294901760, %v5553_v56 }
 0x22a   : > { %3616 = vmatprep.subr.mxu0 %v5553_v56  ;;  %3646 = vmatprep.subr.mxu1 %v6051_v2  ;;  %v6054_v2 = vand.u32 4294901760, %v5254_v7  ;;  %v6058_v7 = vand.u32 4294901760, %v5267_v44  ;;  %v6072_v44 = vand.u32 4294901760, %v5437_v9  ;;  %v2225_v9 = vlaneseq }
 0x22c   : > { %vm3211_vm1 = vcmp.lt.s32.totalorder %v2225_v9, 256 }
 0x22d   : > { %3617 = vmatpush3.xpose.msra.mxu0 %v5563_v51  ;;  %3647 = vmatpush3.xpose.msra.mxu1 %v5503_v19 }
 0x22e   : > { %3648 = vmatprep.subr.mxu1 %v5507_v42  ;;  %3654 = vmatprep.subr.mxu0 %v6052_v34  ;;  %v6055_v42 = vand.u32 4294901760, %v5223_v38  ;;  %v6059_v38 = vand.u32 4294901760, %v5277_v36  ;;  %v6073_v36 = vand.u32 4294901760, %v5453_v52  ;;  %v6089_v52 = vand.u32 4294901760, %v5563_v51 }
 0x230   : > { %3619 = vmatmul.mubr.f32.vlgmr.msra.gmra.mxu0 %v6037_v55 }
 0x231   : > { %3649 = vmatpush3.xpose.msra.mxu1 %v5521_v33  ;;  %3655 = vmatpush3.xpose.msra.mxu0 %v6053_v40 }
 0x232   : > { %3650 = vmatprep.subr.mxu1 %v5535_v48  ;;  %3656 = vmatprep.subr.mxu0 %v6054_v2 }
 0x233   : > { %3686 = vmatprep.mubr.f32.mxu0 %v6038_v31 }
 0x235   : > { %3651 = vmatpush3.xpose.msra.mxu1 %v5546_v29  ;;  %3657 = vmatpush3.xpose.msra.mxu0 %v6055_v42 }
 0x236   : > { %3658 = vmatprep.subr.mxu0 %v6056_v50  ;;  %3688 = vmatprep.subr.mxu1 %v5225_v35  ;;  %v6060_v35 = vand.u32 4294901760, %v5291_v6  ;;  %v6074_v6 = vld [vmem:[#allocation15_spill] sm:$0xff]  ;;  %v2223_v17 = vpop.permute.xlu0 %2222 }
 0x238   : > { %3653 = vmatmul.mubr.f32.vlgmr.msra.gmra.mxu1 %v6039_v21 }
 0x239   : > { %3659 = vmatpush3.xpose.msra.mxu0 %v6057_v28  ;;  %3689 = vmatpush3.xpose.msra.mxu1 %v5197_v41  ;;  %v6062_v41 = vand.u32 4294901760, %v5320_v16 }
 0x23a   : > { %3660 = vmatprep.subr.mxu0 %v6058_v7  ;;  %3690 = vmatprep.subr.mxu1 %v5238_v63  ;;  %v6063_v63 = vand.u32 4294901760, %v5335_v59  ;;  %v6082_v59 = vand.u32 4294901760, %v5527_v14  ;;  %v4167_v7 = vmov 1966171168  }
 0x23b   : > { %3720 = vmatprep.mubr.f32.mxu1 %v6038_v31 }
 0x23d   : > { %3661 = vmatpush3.xpose.msra.mxu0 %v6059_v38  ;;  %3691 = vmatpush3.xpose.msra.mxu1 %v5207_v18  ;;  %v6064_v18 = vand.u32 4294901760, %v5341_v3  ;;  %v6083_v3 = vld [vmem:[#allocation25_spill] sm:$0xff]  ;;  %v3195_v38 = vunpack.c.l.s4 %v4167_v7 }
 0x23e   : > { %3662 = vmatprep.subr.mxu0 %v6060_v35  ;;  %3692 = vmatprep.subr.mxu1 %v5214_v15  ;;  %v6065_v15 = vand.u32 4294901760, %v5358_v37  ;;  %v6085_v37 = vld [vmem:[#allocation26_spill] sm:$0xff] }
 0x241   : > { %3663 = vmatpush3.xpose.msra.mxu0 %v6061_v45  ;;  %3693 = vmatpush3.xpose.msra.mxu1 %v5216_v60  ;;  %v6066_v60 = vand.u32 4294901760, %v5370_v25  ;;  %v6086_v25 = vand.u32 4294901760, %v6085_v37  ;;  %v3196_v45 = vunpack.c.0.s8 %v3195_v38 }
 0x242   : > { %3664 = vmatprep.subr.mxu0 %v6062_v41  ;;  %3694 = vmatprep.subr.mxu1 %v5233_v24  ;;  %v6067_v24 = vand.u32 4294901760, %v5385_v62 }
 0x245   : > { %3665 = vmatpush3.xpose.msra.mxu0 %v6063_v63  ;;  %3695 = vmatpush3.xpose.msra.mxu1 %v5247_v12  ;;  %v6069_v12 = vand.u32 4294901760, %v5405_v13  ;;  %v6088_v13 = vld [vmem:[#allocation6_spill] sm:$0xff] }
 0x246   : > { %3666 = vmatprep.subr.mxu0 %v6064_v18  ;;  %3696 = vmatprep.subr.mxu1 %v5263_v58  ;;  %v6071_v58 = vand.u32 4294901760, %v6040_v46 }
 0x249   : > { %3667 = vmatpush3.xpose.msra.mxu0 %v6065_v15  ;;  %3697 = vmatpush3.xpose.msra.mxu1 %v5242_v54  ;;  %v6070_v54 = vand.u32 4294901760, %v5418_v49  ;;  %v6090_v49 = vld [vmem:[#allocation7_spill] sm:$0xff] }
 0x24a   : > { %3668 = vmatprep.subr.mxu0 %v6066_v60  ;;  %3698 = vmatprep.subr.mxu1 %v5293_v32  ;;  %v6075_v32 = vand.u32 4294901760, %v6074_v6 }
 0x24d   : > { %3669 = vmatpush3.xpose.msra.mxu0 %v6067_v24  ;;  %3699 = vmatpush3.xpose.msra.mxu1 %v5308_v22  ;;  %v6077_v22 = vld [vmem:[#allocation13_spill] sm:$0xff] }
 0x24e   : > { %3670 = vmatprep.subr.mxu0 %v6068_v57  ;;  %3700 = vmatprep.subr.mxu1 %v5317_v20  ;;  %v6078_v62 = vand.u32 4294901760, %v6077_v22  ;;  %v6079_v20 = vld [vmem:[#allocation14_spill] sm:$0xff] }
 0x24f   : > { %v6080_v16 = vand.u32 4294901760, %v6079_v20 }
 0x251   : > { %3671 = vmatpush3.xpose.msra.mxu0 %v6069_v12  ;;  %3701 = vmatpush3.xpose.msra.mxu1 %v5327_v27  ;;  %v6081_v27 = vand.u32 4294901760, %v5513_v1 }
 0x252   : > { %3672 = vmatprep.subr.mxu0 %v6070_v54  ;;  %3702 = vmatprep.subr.mxu1 %v5346_v43  ;;  %v6084_v43 = vand.u32 4294901760, %v5530_v47 }
 0x255   : > { %3673 = vmatpush3.xpose.msra.mxu0 %v6071_v58  ;;  %3703 = vmatpush3.xpose.msra.mxu1 %v6041_v0 }
 0x256   : > { %3674 = vmatprep.subr.mxu0 %v6072_v44  ;;  %3704 = vmatprep.subr.mxu1 %v6042_v26 }
 0x259   : > { %3675 = vmatpush3.xpose.msra.mxu0 %v6073_v36  ;;  %3705 = vmatpush3.xpose.msra.mxu1 %v6043_v5 }
 0x25a   : > { %3676 = vmatprep.subr.mxu0 %v6075_v32  ;;  %3706 = vmatprep.subr.mxu1 %v6044_v30 }
 0x25d   : > { %3677 = vmatpush3.xpose.msra.mxu0 %v6076_v53  ;;  %3707 = vmatpush3.xpose.msra.mxu1 %v6045_v4 }
 0x25e   : > { %3678 = vmatprep.subr.mxu0 %v6078_v62  ;;  %3708 = vmatprep.subr.mxu1 %v6046_v23 }
 0x261   : > { %3679 = vmatpush3.xpose.msra.mxu0 %v6080_v16  ;;  %3709 = vmatpush3.xpose.msra.mxu1 %v6047_v8 }
 0x262   : > { %3680 = vmatprep.subr.mxu0 %v6081_v27  ;;  %3710 = vmatprep.subr.mxu1 %v6048_v61 }
 0x265   : > { %3681 = vmatpush3.xpose.msra.mxu0 %v6082_v59  ;;  %3711 = vmatpush3.xpose.msra.mxu1 %v6083_v3 }
 0x266   : > { %3682 = vmatprep.subr.mxu0 %v6084_v43  ;;  %3712 = vmatprep.subr.mxu1 %v5460_v11  ;;  %v2226_v11 = vshrl.u32 %v2225_v9, 7 }
 0x268   : > { %v2227_v34 = vsub.s32 0, %v2226_v11  ;;  %v3199_v15 = vsub.s32 %v3196_v45, %v2226_v11 }
 0x269   : > { %3683 = vmatpush3.xpose.msra.mxu0 %v6086_v25  ;;  %3713 = vmatpush3.xpose.msra.mxu1 %v6050_v10 }
 0x26a   : > { %3684 = vmatprep.subr.mxu0 %v6087_v39  ;;  %3714 = vmatprep.subr.mxu1 %v6088_v13  ;;  %v2228_v2 = vrot.slane %v2223_v17, %v2227_v34 }
 0x26d   : > { %3685 = vmatpush3.xpose.msra.mxu0 %v6089_v52  ;;  %3715 = vmatpush3.xpose.msra.mxu1 %v5503_v19 }
 0x26e   : > { %3716 = vmatprep.subr.mxu1 %v6090_v49 }
 0x270   : > { %3687 = vmatmul.mubr.f32.vlgmr.msra.gmra.mxu0 %v6038_v31 }
 0x271   : > { %3717 = vmatpush3.xpose.msra.mxu1 %v5521_v33 }
 0x272   : > { %3718 = vmatprep.subr.mxu1 %v5535_v48 }
 0x275   : > { %3719 = vmatpush3.xpose.msra.mxu1 %v5546_v29 }
 0x278   : > { %3721 = vmatmul.mubr.f32.vlgmr.msra.gmra.mxu1 %v6038_v31 }
 0x2b0   : > { %v2431_v10 = vpop.f32.mrf.mxu0 }
 0x2b1   : > { %v2432_v14 = vadd.f32 %v2431_v10, %v2228_v2 }
 0x2b2   : > { %v2433_v42 = vpop.f32.mrf.mxu0 }
 0x2b3   : > { %v2434_v56 = vadd.f32 %v2433_v42, %v2228_v2 }
 0x2b8   : > { %v2663_v19 = vpop.f32.mrf.mxu1 }
 0x2b9   : > { %v2664_v61 = vadd.f32 %v2663_v19, %v2432_v14 }
 0x2ba   : > { %v2665_v47 = vpop.f32.mrf.mxu1 }
 0x2bb   : > { %v2666_v51 = vadd.f32 %v2665_v47, %v2434_v56 }
 0x2f0   : > { %v2800_v1 = vpop.f32.mrf.mxu0 }
 0x2f1   : > { %v2801_v29 = vadd.f32 %v2800_v1, %v2664_v61 }
 0x2f2   : > { %v2802_v40 = vpop.f32.mrf.mxu0 }
 0x2f3   : > { %v2803_v8 = vadd.f32 %v2802_v40, %v2666_v51 }
 0x2f8   : > { %v2906_v33 = vpop.f32.mrf.mxu1 }
 0x2f9   : > { %v2907_v31 = vadd.f32 %v2906_v33, %v2801_v29 }
 0x2fa   : > { %v2908_v55 = vpop.f32.mrf.mxu1 }
 0x2fb   : > { %v2909_v46 = vadd.f32 %v2908_v55, %v2803_v8 }
 0x330   : > { %v3074_v48 = vpop.f32.mrf.mxu0 }
 0x331   : > { %v3075_v0 = vadd.f32 %v3074_v48, %v2907_v31 }
 0x332   : > { %v3076_v21 = vpop.f32.mrf.mxu0 }
 0x333   : > { %v3077_v5 = vadd.f32 %v3076_v21, %v2909_v46 }
 0x338   : > { %v3178_v26 = vpop.f32.mrf.mxu1 }
 0x339   : > { %v3179_v30 = vadd.f32 %v3178_v26, %v3075_v0 }
 0x33a   : > { %v3180_v4 = vpop.f32.mrf.mxu1 }
 0x33b   : > { %v3183_v23 = vmul.f32 0.5, %v3179_v30  ;;  %v3181_v50 = vadd.f32 %v3180_v4, %v3077_v5 }
 0x33d   : > { %4100 = vtanh.f32 %v3183_v23  ;;  %v3184_v28 = vmul.f32 0.5, %v3181_v50 }
 0x33f   : > { %4102 = vtanh.f32 %v3184_v28 }
 0x34a   : > { %v4101_v35 = vpop.eup %4100 }
 0x34b   : > { %v3187_v41 = vadd.f32 1.0, %v4101_v35 }
 0x34c   : > { %v4103_v63 = vpop.eup %4102 }
 0x34d   : > { %v3188_v18 = vadd.f32 1.0, %v4103_v63  ;;  %v3189_v60 = vmul.f32 0.5, %v3187_v41 }
 0x34f   : > { %v3190_v24 = vmul.f32 0.5, %v3188_v18 }
 0x351   : > { %v3193_v57 = vcombine.low %v3189_v60, %v3190_v24 }
 0x353   : > { %v3200_v12 = vrot.slane %v3193_v57, %v3199_v15 }
 0x355   : > { %v3207_v54 = vrot.slane %v3200_v12, %v3199_v15 }
 0x357   : > { %3213 = vst.msk [vmem:[%s220_s8] sm:$0x3] %vm3211_vm1, %v3207_v54 }
 0x358   : > { %4117 = shalt.err (!%p4114_p3)
}
 0x359   : > { %s4118_s19 = scalar_lea.hbm %s3227_s13, 32  ;;  %s4122_s24 = scalar_lea.hbm %s5794_s5, 64 }
 0x35a   : > { %p4119_p4 = scmp.ne.s32.totalorder %s3227_s13, %s4118_s19  ;;  %p4123_p9 = scmp.lt.s32.totalorder %s3227_s13, %s5794_s5 }
 0x35b   : > { %p4124_p10 = scmp.lt.s32.totalorder %s4122_s24, %s4118_s19 }
 0x35c   : > { %p4120_p7 = pnand %p4119_p4, %p4237_p5 }
 0x35d   : > { %p4125_p11 = por %p4124_p10, %p4123_p9 }
 0x35e   : > { %p4121_p8 = pneg %p4120_p7 }
 0x360   : > { %p4126_p12 = pnand %p4125_p11, %p4121_p8 }
 0x362   : > { %4129 = shalt.err (!%p4126_p12)
}
 0x363   : > { %4058 = dma.vmem_to_hbm [thread:$0]  (%p4237_p5), %s3230_s9, 32, %s3227_s13, %s3215_s14  }
 0x364 PF: > { %p4064_p13 = scmp.ge.s32.totalorder %s4164_s23, 2  ;;  %s3241_s6 = sand.u32 1, %s4152_s20  }
 0x365   : > { %s3242_s7 = scalar_lea.sflag [#allocation4], %s3241_s6 }
 0x366   : > { %p4061_p0 = pnand %p4064_p13, %p4241_p6 }
 0x368   : > { %p4062_p1 = pneg %p4061_p0 }
 0x36a   : > { %4147 = dma.done.wait (%p4062_p1), %s3242_s7, 32  }
 0x36b   : > { %4149 = vsyncadd (%p4062_p1), %s3242_s7, 4294967264  ;;  %p17_p2 = scmp.ge.s32.totalorder %s4225_s25, 4   ;;  %s6091_s20 = smov %s4156_s21 }
 0x36c   : > { %s6092_s21 = smov %s4160_s22  ;;  %s6093_s22 = smov %s4235_s28 }
 0x36d   : > { %s6094_s23 = smov %s4225_s25  ;;  %19 = sbr.rel (!%p17_p2) target bundleno = 6 (0x6), region = 75 }
 0x372   :  { %3247 = vsyncpa [#allocation4], 1 }
 0x373   :  { %3249 = vsyncpa [#allocation4 + $0x1], 1 }

</bundles_post_ra>
